<compile_context>
chip_gen: v7x
topology: tpu7x:2x2x1
jax: 0.10.0
libtpu: 0.0.40
codegen_flags: <defaults>
</compile_context>

<pallas_src>
import functools
import math

import jax
import jax.numpy as jnp
from jax.experimental import pallas as pl
from jax.experimental.pallas import tpu as pltpu


def _fused_bottleneck_kernel(xp_ref, w1b_ref, taps_ref, w2b_ref, o_ref, *, hidden):
    """conv1x1 -> ReLU6 -> dwconv3x3 -> ReLU6 -> conv1x1 for one row stripe.

    xp_ref  : (1, THp_r, Wr*Cin)       f32   reflection-padded lane-dense stripe
                                             (2 halo rows + zero junk rows/cols)
    w1b_ref : (Wr*Cin, Wr*hidden)      bf16  block-diagonal expand 1x1 weight
    taps_ref: (9, W*hidden)            f32   depthwise taps, pre-tiled across W
    w2b_ref : (W*hidden, W*oup)        bf16  block-diagonal project 1x1 weight
    o_ref   : (TH, W*oup)              f32   lane-dense output slab
    """
    TH = o_ref.shape[0]            # output rows in this stripe (== tile_h)
    WH = taps_ref.shape[1]         # W * hidden (lane-dense depthwise width)

    xp = xp_ref[0]                                        # (THp_r, Wr*Cin) f32

    # ---- expand 1x1 conv + ReLU6, once for the whole padded stripe (MXU) ----
    # Block-diagonal weight => result is already the lane-dense hidden slab.
    hx = jnp.dot(xp.astype(jnp.bfloat16), w1b_ref[...],
                 preferred_element_type=jnp.float32)      # (THp_r, Wr*hidden)
    hx = jnp.clip(hx, 0.0, 6.0)                           # ReLU6

    # ---- depthwise 3x3 + ReLU6 on full-lane-density slabs (VPU + XLU) ----
    taps = taps_ref[...]                                  # (9, W*hidden), loaded once
    acc = jnp.zeros((TH, WH), jnp.float32)
    for dx in range(3):
        # lane-offset slice == column shift by dx; lowers to an XLU lane-rotate
        # (same unit pltpu.roll would use), leaving the VPU slots for the MACs.
        hxs = hx[:, dx * hidden:dx * hidden + WH]         # (THp_r, W*hidden)
        for dy in range(3):
            k = 3 * dy + dx
            acc = acc + hxs[dy:dy + TH] * taps[k:k + 1]
    d = jnp.clip(acc, 0.0, 6.0)                           # ReLU6, (TH, W*hidden)

    # ---- project 1x1 conv straight into the lane-dense output slab (MXU) ----
    # Single dense (TH, W*oup) store: no per-column masked stores.
    o_ref[...] = jnp.dot(d.astype(jnp.bfloat16), w2b_ref[...],
                         preferred_element_type=jnp.float32)


def _blockdiag_pointwise(w, width):
    """(cin, cout) 1x1-conv weight -> (width*cin, width*cout) block-diagonal."""
    cin, cout = w.shape
    eye = jnp.eye(width, dtype=w.dtype)
    return jnp.einsum("uv,ch->ucvh", eye, w).reshape(width * cin, width * cout)


def inverted_residual_block(x_nchw, w1, wdw, w2, *, tile_h=None):
    """NCHW forward of InvertedResidualBlock via one fused, gridded Pallas kernel."""
    B, Cin, H, W = x_nchw.shape
    hidden = w1.shape[1]
    oup = w2.shape[1]
    assert w1.shape == (Cin, hidden) and wdw.shape == (3, 3, hidden)
    assert w2.shape == (hidden, oup)

    if tile_h is None:
        tile_h = H                   # whole image per grid step (review item #7)
    tile_h = min(tile_h, H)
    assert H % tile_h == 0 and tile_h % 8 == 0 and W % 8 == 0, (
        "demo kernel expects H divisible by an 8-aligned row tile and W % 8 == 0")
    S = H // tile_h
    THp = tile_h + 2                             # stripe rows incl. 1-row halos
    THp_r = ((THp + 7) // 8) * 8                 # sublane-aligned stripe rows
    Wr = ((W + 2 + 7) // 8) * 8                  # padded width: Wr*Cin % 128 == 0

    # NCHW -> NHWC, reflection pad once (commutes with the pointwise conv1 +
    # ReLU6), zero-pad junk columns/rows for alignment, fold (W, C) into one
    # lane-dense axis.  This is the only wrapper-side HBM materialisation.
    x_nhwc = jnp.transpose(x_nchw, (0, 2, 3, 1))
    xp = jnp.pad(x_nhwc, ((0, 0), (1, 1), (1, 1), (0, 0)), mode="reflect")
    xp = jnp.pad(xp, ((0, 0), (0, 0), (0, Wr - (W + 2)), (0, 0)))     # junk cols
    xp = xp.reshape(B, H + 2, Wr * Cin)

    if S == 1:
        stripes = xp                                      # no extra HBM pass
    else:
        # TODO(synk): replace this stripe stack (extra HBM round trip) with
        # pl.Element row indexing or manual make_async_copy of halo'd slices.
        stripes = jnp.concatenate(
            [xp[:, s * tile_h:s * tile_h + THp][:, None] for s in range(S)],
            axis=1).reshape(B * S, THp, Wr * Cin)
    stripes = jnp.pad(stripes, ((0, 0), (0, THp_r - THp), (0, 0)))    # junk rows

    # Lane-dense weights (tiny, built once in plain XLA, VMEM-resident).
    w1_big = _blockdiag_pointwise(w1.astype(jnp.bfloat16), Wr)   # (Wr*Cin, Wr*hidden)
    w2_big = _blockdiag_pointwise(w2.astype(jnp.bfloat16), W)    # (W*hidden, W*oup)
    taps = jnp.tile(wdw.reshape(9, 1, hidden), (1, W, 1)).reshape(9, W * hidden)

    kernel = functools.partial(_fused_bottleneck_kernel, hidden=hidden)
    out = pl.pallas_call(
        kernel,
        out_shape=jax.ShapeDtypeStruct((B * H, W * oup), jnp.float32),
        grid=(B * S,),
        in_specs=[
            pl.BlockSpec((1, THp_r, Wr * Cin), lambda i: (i, 0, 0)),
            pl.BlockSpec((Wr * Cin, Wr * hidden), lambda i: (0, 0)),   # resident
            pl.BlockSpec((9, W * hidden), lambda i: (0, 0)),           # resident
            pl.BlockSpec((W * hidden, W * oup), lambda i: (0, 0)),     # resident
        ],
        out_specs=pl.BlockSpec((tile_h, W * oup), lambda i: (i, 0)),
        compiler_params=pltpu.CompilerParams(
            dimension_semantics=("parallel",),            # even grid: v7x 2-TC split
        ),
    )(stripes, w1_big, taps, w2_big)

    out = out.reshape(B, H, W, oup)
    return jnp.transpose(out, (0, 3, 1, 2))               # back to NCHW


def _reference_forward(x_nchw, w1, wdw, w2):
    """Pure-JAX reference (same bf16 quantization points as the kernel)."""
    q = lambda a: a.astype(jnp.bfloat16).astype(jnp.float32)
    x = q(jnp.transpose(x_nchw, (0, 2, 3, 1)))
    h = jnp.clip(jnp.einsum("bhwc,cd->bhwd", x, q(w1)), 0.0, 6.0)
    hp = jnp.pad(h, ((0, 0), (1, 1), (1, 1), (0, 0)), mode="reflect")
    B, Hp, Wp, C = hp.shape
    H, W = Hp - 2, Wp - 2
    acc = jnp.zeros((B, H, W, C), jnp.float32)
    for dy in range(3):
        for dx in range(3):
            acc = acc + hp[:, dy:dy + H, dx:dx + W, :] * wdw[dy, dx]
    d = jnp.clip(acc, 0.0, 6.0)
    out = jnp.einsum("bhwc,co->bhwo", q(d), q(w2))
    return jnp.transpose(out, (0, 3, 1, 2))


if __name__ == "__main__":
    # InvertedResidualBlock(inp=16, oup=16, expand_ratio=2) on a (2, 16, 16, 16) input.
    B, Cin, H, W = 2, 16, 16, 16
    expand_ratio = 2
    oup = 16
    hidden = int(Cin * expand_ratio)

    key = jax.random.PRNGKey(0)
    kx, k1, k2, k3 = jax.random.split(key, 4)
    x = jax.random.normal(kx, (B, Cin, H, W), jnp.float32)
    w1 = jax.random.normal(k1, (Cin, hidden), jnp.float32) / math.sqrt(Cin)
    wdw = jax.random.normal(k2, (3, 3, hidden), jnp.float32) / 3.0
    w2 = jax.random.normal(k3, (hidden, oup), jnp.float32) / math.sqrt(hidden)

    out = jax.block_until_ready(inverted_residual_block(x, w1, wdw, w2))
    assert out.shape == (B, oup, H, W), out.shape
    assert bool(jnp.all(jnp.isfinite(out)))

    ref = _reference_forward(x, w1, wdw, w2)
    max_err = float(jnp.max(jnp.abs(out - ref)))
    assert max_err < 2e-2, f"kernel/reference mismatch: {max_err}"
    print("KERNEL_OK")
</pallas_src>

<mosaic_0001>
module attributes {stable_mosaic.version = 11 : i64} {
  func.func @_fused_bottleneck_kernel(%arg0: i32, %arg1: memref<1x24x384xf32, #tpu.memory_space<vmem>>, %arg2: memref<384x768xbf16, #tpu.memory_space<vmem>>, %arg3: memref<9x512xf32, #tpu.memory_space<vmem>>, %arg4: memref<512x256xbf16, #tpu.memory_space<vmem>>, %arg5: memref<16x256xf32, #tpu.memory_space<vmem>>) attributes {dimension_semantics = [#tpu.dimension_semantics<parallel>], iteration_bounds = array<i64: 2>, scalar_prefetch = 0 : i64, scratch_operands = 0 : i64, tpu.core_type = #tpu.core_type<tc>, window_params = [{transform_indices = @transform_0, window_bounds = array<i64: 1, 24, 384>}, {pipeline_mode = #tpu.pipeline_mode<synchronous>, transform_indices = @transform_1, window_bounds = array<i64: 384, 768>}, {pipeline_mode = #tpu.pipeline_mode<synchronous>, transform_indices = @transform_2, window_bounds = array<i64: 9, 512>}, {pipeline_mode = #tpu.pipeline_mode<synchronous>, transform_indices = @transform_3, window_bounds = array<i64: 512, 256>}, {transform_indices = @transform_4, window_bounds = array<i64: 16, 256>}]} {
    %c0 = arith.constant 0 : index
    %c0_0 = arith.constant 0 : index
    %c0_1 = arith.constant 0 : index
    %0 = vector.load %arg1[%c0, %c0_0, %c0_1] : memref<1x24x384xf32, #tpu.memory_space<vmem>>, vector<1x24x384xf32>
    %1 = vector.shape_cast %0 : vector<1x24x384xf32> to vector<24x384xf32>
    %2 = arith.truncf %1 : vector<24x384xf32> to vector<24x384xbf16>
    %c0_2 = arith.constant 0 : index
    %c0_3 = arith.constant 0 : index
    %3 = vector.load %arg2[%c0_2, %c0_3] : memref<384x768xbf16, #tpu.memory_space<vmem>>, vector<384x768xbf16>
    %cst = arith.constant dense<0.000000e+00> : vector<24x768xf32>
    %4 = tpu.matmul %2, %3, %cst {dimension_numbers = #tpu.dot_dimension_numbers<[1], [0], [0], [1], [0, 0, 1, 1], [], []>} : vector<24x384xbf16>, vector<384x768xbf16>, vector<24x768xf32> -> vector<24x768xf32>
    %cst_4 = arith.constant 0.000000e+00 : f32
    %cst_5 = arith.constant 6.000000e+00 : f32
    %5 = vector.broadcast %cst_4 : f32 to vector<24x768xf32>
    %6 = arith.maximumf %5, %4 : vector<24x768xf32>
    %7 = vector.broadcast %cst_5 : f32 to vector<24x768xf32>
    %8 = arith.minimumf %7, %6 : vector<24x768xf32>
    %c0_6 = arith.constant 0 : index
    %c0_7 = arith.constant 0 : index
    %9 = vector.load %arg3[%c0_6, %c0_7] : memref<9x512xf32, #tpu.memory_space<vmem>>, vector<9x512xf32>
    %cst_8 = arith.constant 0.000000e+00 : f32
    %10 = vector.broadcast %cst_8 : f32 to vector<16x512xf32>
    %11 = vector.extract_strided_slice %8 {offsets = [0, 0], sizes = [24, 512], strides = [1, 1]} : vector<24x768xf32> to vector<24x512xf32>
    %12 = vector.extract_strided_slice %11 {offsets = [0, 0], sizes = [16, 512], strides = [1, 1]} : vector<24x512xf32> to vector<16x512xf32>
    %13 = vector.extract_strided_slice %9 {offsets = [0, 0], sizes = [1, 512], strides = [1, 1]} : vector<9x512xf32> to vector<1x512xf32>
    %14 = vector.broadcast %13 : vector<1x512xf32> to vector<16x512xf32>
    %15 = arith.mulf %12, %14 : vector<16x512xf32>
    %16 = arith.addf %10, %15 : vector<16x512xf32>
    %17 = vector.extract_strided_slice %11 {offsets = [1, 0], sizes = [16, 512], strides = [1, 1]} : vector<24x512xf32> to vector<16x512xf32>
    %18 = vector.extract_strided_slice %9 {offsets = [3, 0], sizes = [1, 512], strides = [1, 1]} : vector<9x512xf32> to vector<1x512xf32>
    %19 = vector.broadcast %18 : vector<1x512xf32> to vector<16x512xf32>
    %20 = arith.mulf %17, %19 : vector<16x512xf32>
    %21 = arith.addf %16, %20 : vector<16x512xf32>
    %22 = vector.extract_strided_slice %11 {offsets = [2, 0], sizes = [16, 512], strides = [1, 1]} : vector<24x512xf32> to vector<16x512xf32>
    %23 = vector.extract_strided_slice %9 {offsets = [6, 0], sizes = [1, 512], strides = [1, 1]} : vector<9x512xf32> to vector<1x512xf32>
    %24 = vector.broadcast %23 : vector<1x512xf32> to vector<16x512xf32>
    %25 = arith.mulf %22, %24 : vector<16x512xf32>
    %26 = arith.addf %21, %25 : vector<16x512xf32>
    %27 = vector.extract_strided_slice %8 {offsets = [0, 32], sizes = [24, 512], strides = [1, 1]} : vector<24x768xf32> to vector<24x512xf32>
    %28 = vector.extract_strided_slice %27 {offsets = [0, 0], sizes = [16, 512], strides = [1, 1]} : vector<24x512xf32> to vector<16x512xf32>
    %29 = vector.extract_strided_slice %9 {offsets = [1, 0], sizes = [1, 512], strides = [1, 1]} : vector<9x512xf32> to vector<1x512xf32>
    %30 = vector.broadcast %29 : vector<1x512xf32> to vector<16x512xf32>
    %31 = arith.mulf %28, %30 : vector<16x512xf32>
    %32 = arith.addf %26, %31 : vector<16x512xf32>
    %33 = vector.extract_strided_slice %27 {offsets = [1, 0], sizes = [16, 512], strides = [1, 1]} : vector<24x512xf32> to vector<16x512xf32>
    %34 = vector.extract_strided_slice %9 {offsets = [4, 0], sizes = [1, 512], strides = [1, 1]} : vector<9x512xf32> to vector<1x512xf32>
    %35 = vector.broadcast %34 : vector<1x512xf32> to vector<16x512xf32>
    %36 = arith.mulf %33, %35 : vector<16x512xf32>
    %37 = arith.addf %32, %36 : vector<16x512xf32>
    %38 = vector.extract_strided_slice %27 {offsets = [2, 0], sizes = [16, 512], strides = [1, 1]} : vector<24x512xf32> to vector<16x512xf32>
    %39 = vector.extract_strided_slice %9 {offsets = [7, 0], sizes = [1, 512], strides = [1, 1]} : vector<9x512xf32> to vector<1x512xf32>
    %40 = vector.broadcast %39 : vector<1x512xf32> to vector<16x512xf32>
    %41 = arith.mulf %38, %40 : vector<16x512xf32>
    %42 = arith.addf %37, %41 : vector<16x512xf32>
    %43 = vector.extract_strided_slice %8 {offsets = [0, 64], sizes = [24, 512], strides = [1, 1]} : vector<24x768xf32> to vector<24x512xf32>
    %44 = vector.extract_strided_slice %43 {offsets = [0, 0], sizes = [16, 512], strides = [1, 1]} : vector<24x512xf32> to vector<16x512xf32>
    %45 = vector.extract_strided_slice %9 {offsets = [2, 0], sizes = [1, 512], strides = [1, 1]} : vector<9x512xf32> to vector<1x512xf32>
    %46 = vector.broadcast %45 : vector<1x512xf32> to vector<16x512xf32>
    %47 = arith.mulf %44, %46 : vector<16x512xf32>
    %48 = arith.addf %42, %47 : vector<16x512xf32>
    %49 = vector.extract_strided_slice %43 {offsets = [1, 0], sizes = [16, 512], strides = [1, 1]} : vector<24x512xf32> to vector<16x512xf32>
    %50 = vector.extract_strided_slice %9 {offsets = [5, 0], sizes = [1, 512], strides = [1, 1]} : vector<9x512xf32> to vector<1x512xf32>
    %51 = vector.broadcast %50 : vector<1x512xf32> to vector<16x512xf32>
    %52 = arith.mulf %49, %51 : vector<16x512xf32>
    %53 = arith.addf %48, %52 : vector<16x512xf32>
    %54 = vector.extract_strided_slice %43 {offsets = [2, 0], sizes = [16, 512], strides = [1, 1]} : vector<24x512xf32> to vector<16x512xf32>
    %55 = vector.extract_strided_slice %9 {offsets = [8, 0], sizes = [1, 512], strides = [1, 1]} : vector<9x512xf32> to vector<1x512xf32>
    %56 = vector.broadcast %55 : vector<1x512xf32> to vector<16x512xf32>
    %57 = arith.mulf %54, %56 : vector<16x512xf32>
    %58 = arith.addf %53, %57 : vector<16x512xf32>
    %cst_9 = arith.constant 0.000000e+00 : f32
    %cst_10 = arith.constant 6.000000e+00 : f32
    %59 = vector.broadcast %cst_9 : f32 to vector<16x512xf32>
    %60 = arith.maximumf %59, %58 : vector<16x512xf32>
    %61 = vector.broadcast %cst_10 : f32 to vector<16x512xf32>
    %62 = arith.minimumf %61, %60 : vector<16x512xf32>
    %63 = arith.truncf %62 : vector<16x512xf32> to vector<16x512xbf16>
    %c0_11 = arith.constant 0 : index
    %c0_12 = arith.constant 0 : index
    %64 = vector.load %arg4[%c0_11, %c0_12] : memref<512x256xbf16, #tpu.memory_space<vmem>>, vector<512x256xbf16>
    %cst_13 = arith.constant dense<0.000000e+00> : vector<16x256xf32>
    %65 = tpu.matmul %63, %64, %cst_13 {dimension_numbers = #tpu.dot_dimension_numbers<[1], [0], [0], [1], [0, 0, 1, 1], [], []>} : vector<16x512xbf16>, vector<512x256xbf16>, vector<16x256xf32> -> vector<16x256xf32>
    %c0_14 = arith.constant 0 : index
    %c0_15 = arith.constant 0 : index
    %66 = vector.load %arg5[%c0_14, %c0_15] : memref<16x256xf32, #tpu.memory_space<vmem>>, vector<16x256xf32>
    tpu.vector_store %arg5[%c0_14, %c0_15], %65 {strides = array<i32>} : memref<16x256xf32, #tpu.memory_space<vmem>>, vector<16x256xf32>,
    return
  }
  func.func @transform_0(%arg0: i32) -> (i32, i32, i32) {
    %c0_i32 = arith.constant 0 : i32
    %c0_i32_0 = arith.constant 0 : i32
    %c0_i32_1 = arith.constant 0 : i32
    return %arg0, %c0_i32, %c0_i32_0 : i32, i32, i32
  }
  func.func @transform_1(%arg0: i32) -> (i32, i32) {
    %c0_i32 = arith.constant 0 : i32
    %c0_i32_0 = arith.constant 0 : i32
    %c0_i32_1 = arith.constant 0 : i32
    return %c0_i32, %c0_i32_0 : i32, i32
  }
  func.func @transform_2(%arg0: i32) -> (i32, i32) {
    %c0_i32 = arith.constant 0 : i32
    %c0_i32_0 = arith.constant 0 : i32
    %c0_i32_1 = arith.constant 0 : i32
    return %c0_i32, %c0_i32_0 : i32, i32
  }
  func.func @transform_3(%arg0: i32) -> (i32, i32) {
    %c0_i32 = arith.constant 0 : i32
    %c0_i32_0 = arith.constant 0 : i32
    %c0_i32_1 = arith.constant 0 : i32
    return %c0_i32, %c0_i32_0 : i32, i32
  }
  func.func @transform_4(%arg0: i32) -> (i32, i32) {
    %c0_i32 = arith.constant 0 : i32
    %c0_i32_0 = arith.constant 0 : i32
    return %arg0, %c0_i32 : i32, i32
  }
}

</mosaic_0001>

<bundles_post_ra>
// kernel: tpu_custom_call.1
= control target key start
LH: loop header
LB: loop body
LE: loop exit
PB: predicated region body
PF: predicated region fallthrough
CT: control target
= control target key end

     0   :  { %9 = vsyncpa [#allocation3], 0  ;;  %s5113_s0 = inlined_call_operand.hbm [shape: f32[2,24,384], index: 0, kind: input, shape index: {}]   ;;  %s5114_s1 = inlined_call_operand.hbm [shape: bf16[384,768], index: 1, kind: input, shape index: {}]   ;;  %s5115_s2 = inlined_call_operand.hbm [shape: f32[9,512], index: 2, kind: input, shape index: {}]   ;;  %s5116_s3 = inlined_call_operand.hbm [shape: bf16[512,256], index: 3, kind: input, shape index: {}]   ;;  %s5117_s4 = inlined_call_operand.hbm [shape: f32[32,256], index: 4, kind: output, shape index: {}]  }
   0x1   :  { %11 = vsyncpa [#allocation3 + $0x1], 0 }
   0x2   :  { %12 = vsyncpa [#allocation6], 0 }
   0x3   :  { %13 = vsyncpa [#allocation9], 0 }
   0x4   :  { %14 = vsyncpa [#allocation4], 0 }
   0x5   :  { %16 = vsyncpa [#allocation4 + $0x1], 0  ;;  %s3915_s15 = smov 0   ;;  %s3917_s16 = smov 0  }
   0x6   :  { %s3919_s17 = smov 0   ;;  %s3921_s18 = smov 0  }
   0x7 LB: > { %s3936_s19 = sadd.s32 4294967295, %s3871_s18   ;;  %s3019_s20 = sadd.s32 4294967294, %s3871_s18   ;;  %s3871_s18 = sphi %s3921_s18, %s5205_s18   ;;  %s3867_s17 = sphi %s3919_s17, %s5204_s17   ;;  %s3863_s16 = sphi %s3917_s16, %s5203_s16   ;;  %s3859_s15 = sphi %s3915_s15, %s5202_s15  }
   0x8   : > { %p42_p0 = scmp.ne.s32.totalorder %s3863_s16, %s3859_s15  ;;  %p5118_p1 = scmp.eq.s32.totalorder %s3936_s19, 0 }
   0x9   : > { %p135_p3 = scmp.eq.s32.totalorder %s3019_s20, 1  ;;  %p3020_p5 = scmp.ge.s32.totalorder %s3871_s18, 1 }
   0xa   : > { %p3945_p4 = por %p5118_p1, %p42_p0  ;;  %p142_p7 = scmp.lt.s32.totalorder %s3871_s18, 3 }
   0xb   : > { %p3950_p6 = por %p135_p3, %p42_p0  ;;  %s3873_s24 = smov [#allocation5]  }
   0xc   : > { %s5147_s21 = scalar_select %p3945_p4, 1, 0 }
   0xd   : > { %s5148_s22 = scalar_select %p3950_p6, 1, 0 }
   0xe   : > { %p3955_p8 = pnand %p3020_p5, %p142_p7  ;;  %s154_s25 = sshll.u32 %s3873_s24, 4  ;;  %s3959_s25 = int_to_ptr.vmem [resolvable:$true] %s154_s25 }
   0xf   : > { %s3874_s27 = smov [#allocation7]   ;;  %s3683_s5 = scalar_lea.hbm %s5114_s1, 18432 }
  0x10   : > { %s5149_s23 = scalar_select %p3955_p8, 1, 0 }
  0x11   : > { %p3298_p9 = pneg %p3955_p8  ;;  %s167_s28 = sshll.u32 %s3874_s27, 4  ;;  %s3970_s28 = int_to_ptr.vmem [resolvable:$true] %s167_s28 }
  0x12   : > { %p3684_p12 = scmp.ne.s32.totalorder %s5114_s1, %s3683_s5  ;;  %p3690_p5 = scmp.lt.u32.totalorder %s3683_s5, %s5114_s1 }
  0x13   : > { %p3966_p11 = pnand %p3298_p9, %p5118_p1 }
  0x15   : > { %p3980_p13 = pneg %p3966_p11 }
  0x17   : > { %p3686_p0 = pnand %p3980_p13, %p3684_p12 }
  0x19   : > { %p3687_p3 = pneg %p3686_p0 }
  0x1b   : > { %p3692_p7 = pnand %p3690_p5, %p3687_p3 }
  0x1d   : > { %3695 = shalt.err (!%p3692_p7)
}
  0x1e   : > { %s3696_s11 = scalar_lea.vmem %s3959_s25, 18432  ;;  %p3704_p2 = scmp.lt.s32.totalorder %s3959_s25, %s3959_s25 }
  0x1f   : > { %p3697_p9 = scmp.ne.s32.totalorder %s3959_s25, %s3696_s11  ;;  %p3705_p6 = scmp.lt.s32.totalorder %s3696_s11, %s3696_s11 }
  0x21   : > { %p3699_p10 = pnand %p3697_p9, %p3980_p13  ;;  %p3706_p12 = por %p3705_p6, %p3704_p2 }
  0x23   : > { %p3700_p1 = pneg %p3699_p10 }
  0x25   : > { %p3707_p0 = pnand %p3706_p12, %p3700_p1 }
  0x27   : > { %3710 = shalt.err (!%p3707_p0)
}
  0x28   : > { %s3875_s12 = smov 384   ;;  %s3876_s13 = smov 24  }
  0x29   : > { %3301 = dma.hbm_to_vmem [thread:$0]  (!%p3966_p11), %s5114_s1, 18432, %s3959_s25, [#allocation6], %s3875_s12, %s3875_s12, %s3876_s13  }
  0x2a   : > { %s3711_s29 = scalar_lea.hbm %s5115_s2, 1024 }
  0x2b   : > { %p3712_p1 = scmp.ne.s32.totalorder %s5115_s2, %s3711_s29  ;;  %p3718_p10 = scmp.lt.u32.totalorder %s3711_s29, %s5115_s2 }
  0x2d   : > { %p3714_p2 = pnand %p3712_p1, %p3980_p13 }
  0x2f   : > { %p3715_p6 = pneg %p3714_p2 }
  0x31   : > { %p3720_p3 = pnand %p3718_p10, %p3715_p6 }
  0x33   : > { %3723 = shalt.err (!%p3720_p3)
}
  0x34   : > { %s3724_s25 = scalar_lea.vmem %s3970_s28, 1024  ;;  %p3732_p12 = scmp.lt.s32.totalorder %s3970_s28, %s3970_s28 }
  0x35   : > { %p3725_p5 = scmp.ne.s32.totalorder %s3970_s28, %s3724_s25  ;;  %p3733_p0 = scmp.lt.s32.totalorder %s3724_s25, %s3724_s25 }
  0x37   : > { %p3727_p7 = pnand %p3725_p5, %p3980_p13  ;;  %p3734_p1 = por %p3733_p0, %p3732_p12 }
  0x39   : > { %p3728_p9 = pneg %p3727_p7 }
  0x3b   : > { %p3735_p2 = pnand %p3734_p1, %p3728_p9 }
  0x3d   : > { %3738 = shalt.err (!%p3735_p2)
}
  0x3e   : > { %s3877_s9 = smov 512   ;;  %s3878_s10 = smov 32  }
  0x3f   : > { %3304 = dma.hbm_to_vmem [thread:$0]  (!%p3966_p11), %s5115_s2, 1024, %s3970_s28, [#allocation6], %s3877_s9, %s3877_s9, %s3878_s10  }
  0x40   : > { %s3879_s20 = smov [#allocation8]   ;;  %s3739_s30 = scalar_lea.hbm %s5116_s3, 8192 }
  0x41   : > { %s180_s24 = sshll.u32 %s3879_s20, 4  ;;  %p3740_p6 = scmp.ne.s32.totalorder %s5116_s3, %s3739_s30  ;;  %s181_s24 = int_to_ptr.vmem [resolvable:$true] %s180_s24 }
  0x42   : > { %p3746_p5 = scmp.lt.u32.totalorder %s3739_s30, %s5116_s3 }
  0x43   : > { %p3742_p10 = pnand %p3740_p6, %p3980_p13 }
  0x45   : > { %p3743_p3 = pneg %p3742_p10 }
  0x47   : > { %p3748_p7 = pnand %p3746_p5, %p3743_p3 }
  0x49   : > { %3751 = shalt.err (!%p3748_p7)
}
  0x4a   : > { %s3752_s28 = scalar_lea.vmem %s181_s24, 8192  ;;  %p3760_p1 = scmp.lt.s32.totalorder %s181_s24, %s181_s24 }
  0x4b   : > { %p3753_p9 = scmp.ne.s32.totalorder %s181_s24, %s3752_s28  ;;  %p3761_p2 = scmp.lt.s32.totalorder %s3752_s28, %s3752_s28 }
  0x4d   : > { %p3755_p12 = pnand %p3753_p9, %p3980_p13  ;;  %p3762_p4 = por %p3761_p2, %p3760_p1 }
  0x4f   : > { %p3756_p0 = pneg %p3755_p12 }
  0x51   : > { %p3763_p8 = pnand %p3762_p4, %p3756_p0 }
  0x53   : > { %3766 = shalt.err (!%p3763_p8)
}
  0x54   : > { %s3880_s9 = smov 128   ;;  %s3881_s8 = smov 8  }
  0x55   : > { %3307 = dma.hbm_to_vmem [thread:$0]  (!%p3966_p11), %s5116_s3, 8192, %s181_s24, [#allocation9], %s3880_s9, %s3880_s9, %s3881_s8  }
  0x56   : > { %s4046_s14 = sadd.s32 1, %s3871_s18   ;;  %s29_s27 = sadd.s32 1, %s3867_s17 }
  0x57   : > { %s26_s20 = ssub.s32 %s3871_s18, %s4046_s14  ;;  %p36_p8 = scmp.ne.s32.totalorder %s3867_s17, %s3863_s16 }
  0x58   : > { %p27_p4 = scmp.eq.s32.totalorder %s26_s20, 0  ;;  %p37_p13 = scmp.eq.s32.totalorder %s3871_s18, 0 }
  0x59   : > { %p3319_p6 = scmp.lt.s32.totalorder %s3871_s18, 2  ;;  %p5152_p3 = scmp.eq.s32.totalorder %s3936_s19, 1 }
  0x5a   : > { %s4056_s29 = scalar_select %p27_p4, %s3867_s17, %s29_s27  }
  0x5b   : > { %p38_p10 = por %p37_p13, %p36_p8  ;;  %p4060_p5 = por %p5152_p3, %p36_p8 }
  0x5c   : > { %s194_s26 = sand.u32 1, %s3867_s17   ;;  %s3280_s5 = smul.u32 1152, %s3871_s18 }
  0x5d   : > { %s3279_s24 = smul.u32 72, %s194_s26  ;;  %p4066_p11 = pnand %p3319_p6, %p38_p10 }
  0x5e   : > { %s4073_s28 = scalar_lea.hbm %s5113_s0, %s3280_s5  ;;  %s4077_s10 = scalar_lea.sflag [#allocation3], %s194_s26 }
  0x5f   : > { %s198_s9 = scalar_lea.vmem [#allocation2], %s3279_s24  ;;  %s3767_s11 = scalar_lea.hbm %s4073_s28, 1152 }
  0x60   : > { %s205_s8 = sshll.u32 %s198_s9, 4  ;;  %p3768_p7 = scmp.ne.s32.totalorder %s4073_s28, %s3767_s11  ;;  %s4075_s8 = int_to_ptr.vmem [resolvable:$true] %s205_s8 }
  0x61   : > { %p3769_p9 = pneg %p4066_p11  ;;  %s3772_s5 = scalar_lea.hbm %s5113_s0, 2304 }
  0x62   : > { %p3773_p1 = scmp.lt.u32.totalorder %s4073_s28, %s5113_s0  ;;  %p3774_p2 = scmp.lt.u32.totalorder %s3772_s5, %s3767_s11 }
  0x63   : > { %p3770_p12 = pnand %p3769_p9, %p3768_p7  ;;  %p3776_p8 = scmp.lt.u32.totalorder %s3767_s11, %s4073_s28 }
  0x64   : > { %p3775_p4 = por %p3774_p2, %p3773_p1 }
  0x65   : > { %p3771_p0 = pneg %p3770_p12 }
  0x66   : > { %p3777_p13 = por %p3776_p8, %p3775_p4 }
  0x68   : > { %p3778_p6 = pnand %p3777_p13, %p3771_p0 }
  0x6a   : > { %3781 = shalt.err (!%p3778_p6)
}
  0x6b   : > { %s3782_s26 = scalar_lea.vmem %s4075_s8, 1152  ;;  %s3882_s24 = smov [#allocation2]  }
  0x6c   : > { %p3783_p10 = scmp.ne.s32.totalorder %s4075_s8, %s3782_s26  ;;  %s3787_s9 = sshll.u32 %s3882_s24, 4  ;;  %s3788_s9 = int_to_ptr.vmem [resolvable:$false] %s3787_s9 }
  0x6d   : > { %s3789_s20 = scalar_lea.vmem %s3788_s9, 2304  ;;  %p3790_p12 = scmp.lt.s32.totalorder %s4075_s8, %s3788_s9 }
  0x6e   : > { %p3785_p3 = pnand %p3783_p10, %p3769_p9  ;;  %p3791_p1 = scmp.lt.s32.totalorder %s3789_s20, %s3782_s26 }
  0x70   : > { %p3786_p7 = pneg %p3785_p3  ;;  %p3792_p2 = por %p3791_p1, %p3790_p12 }
  0x72   : > { %p3793_p4 = pnand %p3792_p2, %p3786_p7 }
  0x74   : > { %3796 = shalt.err (!%p3793_p4)
}
  0x75   : > { %3311 = dma.hbm_to_vmem [thread:$0]  (!%p4066_p11), %s4073_s28, 1152, %s4075_s8, %s4077_s10, %s3875_s12, %s3875_s12, %s3876_s13  }
  0x76   : > { %p5155_p9 = scmp.ne.s32.totalorder %s5149_s23, 0 }
  0x78   : > { %217 = sbr.rel (%p5155_p9) target bundleno = 949 (0x3b5), region = 36 }
  0x7f   : > { %s4111_s11 = sand.u32 1, %s3863_s16   ;;  %p5156_p0 = scmp.ne.s32.totalorder %s5147_s21, 0 }
  0x80   : > { %s3281_s27 = smul.u32 72, %s4111_s11  ;;  %s220_s5 = scalar_lea.sflag [#allocation3], %s4111_s11 }
  0x82   : > { %s4115_s7 = scalar_lea.vmem [#allocation2], %s3281_s27 }
  0x83   : > { %3842 = dma.done.wait (%p5156_p0), %s220_s5, 1152  }
  0x84   : > { %3844 = vsyncadd (%p5156_p0), %s220_s5, 4294966144  ;;  %p5157_p11 = scmp.eq.s32.totalorder %s3936_s19, 0 }
  0x86   : > { %3846 = dma.done.wait (%p5157_p11), [#allocation6], 19456   ;;  %p5158_p8 = pmov %p5157_p11 }
  0x88   : > { %3848 = vsyncadd (%p5158_p8), [#allocation6], 4294947840  ;;  %p5159_p13 = pmov %p5158_p8 }
  0x89   : > { %p5160_p6 = pmov %p5158_p8 }
  0x8a   : > { %3850 = dma.done.wait (%p5159_p13), [#allocation9], 8192  }
  0x8b   : > { %3852 = vsyncadd (%p5160_p6), [#allocation9], 4294959104  ;;  %v3371_v0 = vld [vmem:[#allocation5 + $0x4] ss:$24 sps:$4 sm:$0xff]   ;;  %v3375_v2 = vld [vmem:[#allocation5] ss:$24 sps:$4 sm:$0xff]  }
  0x8c   : > { %v3373_v1 = vld [vmem:[#allocation5 + $0xc] ss:$24 sps:$4 sm:$0xff]   ;;  %1141 = vmatprep.subr.bf16.mxu0 %v3371_v0  ;;  %v3376_v3 = vld [vmem:[#allocation5 + $0x8] ss:$24 sps:$4 sm:$0xff]   ;;  %v3379_v5 = vld [vmem:[#allocation5 + $0x3c] ss:$24 sps:$4 sm:$0xff]  }
  0x8d   : > { %1243 = vmatprep.subr.bf16.mxu1 %v3373_v1  ;;  %v3377_v4 = vld [vmem:[#allocation5 + $0x34] ss:$24 sps:$4 sm:$0xff]   ;;  %1142 = vmatpush1.bf16.msra.mxu0 %v3375_v2  ;;  %v3381_v6 = vld [vmem:[#allocation5 + $0x30] ss:$24 sps:$4 sm:$0xff]   ;;  %v3383_v8 = vld [vmem:[#allocation5 + $0x64] ss:$24 sps:$4 sm:$0xff]  }
  0x8e   : > { %1244 = vmatpush1.bf16.msra.mxu1 %v3376_v3  ;;  %1143 = vmatprep.subr.bf16.mxu0 %v3377_v4  ;;  %v3382_v7 = vld [vmem:[#allocation5 + $0x38] ss:$24 sps:$4 sm:$0xff]   ;;  %v3385_v9 = vld [vmem:[#allocation5 + $0x6c] ss:$24 sps:$4 sm:$0xff]   ;;  %v3388_v11 = vld [vmem:[#allocation5 + $0x68] ss:$24 sps:$4 sm:$0xff]  }
  0x8f   : > { %1245 = vmatprep.subr.bf16.mxu1 %v3379_v5  ;;  %v3387_v10 = vld [vmem:[#allocation5 + $0x60] ss:$24 sps:$4 sm:$0xff]   ;;  %v3389_v12 = vld [vmem:[#allocation5 + $0x94] ss:$24 sps:$4 sm:$0xff]   ;;  %v3393_v14 = vld [vmem:[#allocation5 + $0x90] ss:$24 sps:$4 sm:$0xff]  }
  0x90   : > { %v3391_v13 = vld [vmem:[#allocation5 + $0x9c] ss:$24 sps:$4 sm:$0xff]   ;;  %v3394_v15 = vld [vmem:[#allocation5 + $0x98] ss:$24 sps:$4 sm:$0xff]   ;;  %v3397_v17 = vld [vmem:[#allocation5 + $0xcc] ss:$24 sps:$4 sm:$0xff]  }
  0x91   : > { %1144 = vmatpush1.bf16.msra.mxu0 %v3381_v6  ;;  %v3395_v16 = vld [vmem:[#allocation5 + $0xc4] ss:$24 sps:$4 sm:$0xff]   ;;  %v3399_v18 = vld [vmem:[#allocation5 + $0xc0] ss:$24 sps:$4 sm:$0xff]   ;;  %v3401_v20 = vld [vmem:[#allocation5 + $0xf4] ss:$24 sps:$4 sm:$0xff]  }
  0x92   : > { %1246 = vmatpush1.bf16.msra.mxu1 %v3382_v7  ;;  %1145 = vmatprep.subr.bf16.mxu0 %v3383_v8  ;;  %v3400_v19 = vld [vmem:[#allocation5 + $0xc8] ss:$24 sps:$4 sm:$0xff]   ;;  %v3403_v21 = vld [vmem:[#allocation5 + $0xfc] ss:$24 sps:$4 sm:$0xff]   ;;  %v3406_v23 = vld [vmem:[#allocation5 + $0xf8] ss:$24 sps:$4 sm:$0xff]  }
  0x93   : > { %1247 = vmatprep.subr.bf16.mxu1 %v3385_v9  ;;  %v3405_v22 = vld [vmem:[#allocation5 + $0xf0] ss:$24 sps:$4 sm:$0xff]   ;;  %v3407_v24 = vld [vmem:[#allocation5 + $0x124] ss:$24 sps:$4 sm:$0xff]   ;;  %v3411_v26 = vld [vmem:[#allocation5 + $0x120] ss:$24 sps:$4 sm:$0xff]  }
  0x94   : > { %v3409_v25 = vld [vmem:[#allocation5 + $0x12c] ss:$24 sps:$4 sm:$0xff]   ;;  %v3412_v27 = vld [vmem:[#allocation5 + $0x128] ss:$24 sps:$4 sm:$0xff]   ;;  %v3415_v29 = vld [vmem:[#allocation5 + $0x15c] ss:$24 sps:$4 sm:$0xff]  }
  0x95   : > { %1146 = vmatpush1.bf16.msra.mxu0 %v3387_v10  ;;  %v3413_v28 = vld [vmem:[#allocation5 + $0x154] ss:$24 sps:$4 sm:$0xff]   ;;  %v3417_v30 = vld [vmem:[#allocation5 + $0x150] ss:$24 sps:$4 sm:$0xff]   ;;  %v3419_v32 = vld [vmem:[#allocation5 + $0x184] ss:$24 sps:$4 sm:$0xff]  }
  0x96   : > { %1248 = vmatpush1.bf16.msra.mxu1 %v3388_v11  ;;  %1147 = vmatprep.subr.bf16.mxu0 %v3389_v12  ;;  %v3418_v31 = vld [vmem:[#allocation5 + $0x158] ss:$24 sps:$4 sm:$0xff]   ;;  %v3421_v33 = vld [vmem:[#allocation5 + $0x18c] ss:$24 sps:$4 sm:$0xff]   ;;  %v3424_v35 = vld [vmem:[#allocation5 + $0x188] ss:$24 sps:$4 sm:$0xff]  }
  0x97   : > { %1249 = vmatprep.subr.bf16.mxu1 %v3391_v13  ;;  %v3423_v34 = vld [vmem:[#allocation5 + $0x180] ss:$24 sps:$4 sm:$0xff]   ;;  %v3425_v36 = vld [vmem:[#allocation5 + $0x1b4] ss:$24 sps:$4 sm:$0xff]   ;;  %v3429_v38 = vld [vmem:[#allocation5 + $0x1b0] ss:$24 sps:$4 sm:$0xff]  }
  0x98   : > { %v3427_v37 = vld [vmem:[#allocation5 + $0x1bc] ss:$24 sps:$4 sm:$0xff]   ;;  %v3430_v39 = vld [vmem:[#allocation5 + $0x1b8] ss:$24 sps:$4 sm:$0xff]   ;;  %v3433_v41 = vld [vmem:[#allocation5 + $0x1ec] ss:$24 sps:$4 sm:$0xff]  }
  0x99   : > { %1148 = vmatpush1.bf16.msra.mxu0 %v3393_v14  ;;  %v3431_v40 = vld [vmem:[#allocation5 + $0x1e4] ss:$24 sps:$4 sm:$0xff]   ;;  %v3435_v42 = vld [vmem:[#allocation5 + $0x1e0] ss:$24 sps:$4 sm:$0xff]   ;;  %v3437_v44 = vld [vmem:[#allocation5 + $0x214] ss:$24 sps:$4 sm:$0xff]  }
  0x9a   : > { %1250 = vmatpush1.bf16.msra.mxu1 %v3394_v15  ;;  %1149 = vmatprep.subr.bf16.mxu0 %v3395_v16  ;;  %v3436_v43 = vld [vmem:[#allocation5 + $0x1e8] ss:$24 sps:$4 sm:$0xff]   ;;  %v3439_v45 = vld [vmem:[#allocation5 + $0x21c] ss:$24 sps:$4 sm:$0xff]   ;;  %v3442_v49 = vld [vmem:[#allocation5 + $0x218] ss:$24 sps:$4 sm:$0xff]  }
  0x9b   : > { %1251 = vmatprep.subr.bf16.mxu1 %v3397_v17  ;;  %v263_v46 = vld [vmem:[%s4115_s7 + $0x8] sm:$0xff]  ;;  %v266_v47 = vld [vmem:[%s4115_s7 + $0x20] sm:$0xff]  ;;  %v265_v4 = vld [vmem:[%s4115_s7 + $0x18] sm:$0xff]  ;;  %s3884_s21 = smov 32   ;;  %s3885_s23 = smov 64   ;;  %vm1693_vm0 = vcmask 261120  }
  0x9c   : > { %v3441_v48 = vld [vmem:[#allocation5 + $0x210] ss:$24 sps:$4 sm:$0xff]   ;;  %v4131_v50 = vpack.c.bf16 %v266_v47, %v263_v46  ;;  %v3443_v51 = vld [vmem:[#allocation5 + $0x244] ss:$24 sps:$4 sm:$0xff]   ;;  %v3447_v53 = vld [vmem:[#allocation5 + $0x240] ss:$24 sps:$4 sm:$0xff]  }
  0x9d   : > { %1150 = vmatpush1.bf16.msra.mxu0 %v3399_v18  ;;  %v3445_v52 = vld [vmem:[#allocation5 + $0x24c] ss:$24 sps:$4 sm:$0xff]   ;;  %v3448_v54 = vld [vmem:[#allocation5 + $0x248] ss:$24 sps:$4 sm:$0xff]   ;;  %v3451_v56 = vld [vmem:[#allocation5 + $0x27c] ss:$24 sps:$4 sm:$0xff]  }
  0x9e   : > { %1252 = vmatpush1.bf16.msra.mxu1 %v3400_v19  ;;  %1151 = vmatprep.subr.bf16.mxu0 %v3401_v20  ;;  %v3449_v55 = vld [vmem:[#allocation5 + $0x274] ss:$24 sps:$4 sm:$0xff]   ;;  %v3453_v57 = vld [vmem:[#allocation5 + $0x270] ss:$24 sps:$4 sm:$0xff]   ;;  %v3455_v59 = vld [vmem:[#allocation5 + $0x2a4] ss:$24 sps:$4 sm:$0xff]  }
  0x9f   : > { %1253 = vmatprep.subr.bf16.mxu1 %v3403_v21  ;;  %1173 = vmatprep.mubr.bf16.mxu0 %v4131_v50  ;;  %v3454_v58 = vld [vmem:[#allocation5 + $0x278] ss:$24 sps:$4 sm:$0xff]   ;;  %v3457_v60 = vld [vmem:[#allocation5 + $0x2ac] ss:$24 sps:$4 sm:$0xff]   ;;  %v3460_v62 = vld [vmem:[#allocation5 + $0x2a8] ss:$24 sps:$4 sm:$0xff]  }
  0xa0   : > { %1275 = vmatprep.mubr.bf16.mxu1 %v4131_v50  ;;  %v3459_v61 = vld [vmem:[#allocation5 + $0x2a0] ss:$24 sps:$4 sm:$0xff]   ;;  %v3461_v63 = vld [vmem:[#allocation5 + $0x2d4] ss:$24 sps:$4 sm:$0xff]   ;;  %v3465_v1 = vld [vmem:[#allocation5 + $0x2d0] ss:$24 sps:$4 sm:$0xff]  }
  0xa1   : > { %1152 = vmatpush1.bf16.msra.mxu0 %v3405_v22  ;;  %v3463_v0 = vld [vmem:[#allocation5 + $0x2dc] ss:$24 sps:$4 sm:$0xff]   ;;  %v3466_v2 = vld [vmem:[#allocation5 + $0x2d8] ss:$24 sps:$4 sm:$0xff]   ;;  %v3472_v6 = vld [vmem:[#allocation5 + $0x30c] ss:$24 sps:$4 sm:$0xff]  }
  0xa2   : > { %1254 = vmatpush1.bf16.msra.mxu1 %v3406_v23  ;;  %1153 = vmatprep.subr.bf16.mxu0 %v3407_v24  ;;  %v262_v3 = vld [vmem:[%s4115_s7] sm:$0xff]  ;;  %v269_v8 = vld [vmem:[%s4115_s7 + $0x38] sm:$0xff]  ;;  %v268_v16 = vld [vmem:[%s4115_s7 + $0x30] sm:$0xff]  ;;  %v1479_v24 = vlaneseq  ;;  %vm2065_vm1 = vcmask 523264   ;;  %vm1551_vm2 = vcmask 1046528   ;;  %vm1628_vm3 = vcmask 1045504  }
  0xa3   : > { %1255 = vmatprep.subr.bf16.mxu1 %v3409_v25  ;;  %v3469_v5 = vld [vmem:[#allocation5 + $0x304] ss:$24 sps:$4 sm:$0xff]   ;;  %v4137_v7 = vpack.c.bf16 %v265_v4, %v262_v3  ;;  %v3467_v9 = vld [vmem:[#allocation5 + $0x300] ss:$24 sps:$4 sm:$0xff]   ;;  %v3475_v11 = vld [vmem:[#allocation5 + $0x334] ss:$24 sps:$4 sm:$0xff]   ;;  %v4140_v13 = vpack.c.bf16 %v269_v8, %v269_v8  ;;  %v4147_v20 = vpack.c.bf16 %v268_v16, %v268_v16 }
  0xa4   : > { %v3470_v10 = vld [vmem:[#allocation5 + $0x308] ss:$24 sps:$4 sm:$0xff]   ;;  %v3478_v12 = vld [vmem:[#allocation5 + $0x33c] ss:$24 sps:$4 sm:$0xff]   ;;  %v3476_v15 = vld [vmem:[#allocation5 + $0x338] ss:$24 sps:$4 sm:$0xff]  }
  0xa5   : > { %1154 = vmatpush1.bf16.msra.mxu0 %v3411_v26  ;;  %v3473_v14 = vld [vmem:[#allocation5 + $0x330] ss:$24 sps:$4 sm:$0xff]   ;;  %v3481_v17 = vld [vmem:[#allocation5 + $0x364] ss:$24 sps:$4 sm:$0xff]   ;;  %v3479_v19 = vld [vmem:[#allocation5 + $0x360] ss:$24 sps:$4 sm:$0xff]  }
  0xa6   : > { %1256 = vmatpush1.bf16.msra.mxu1 %v3412_v27  ;;  %1155 = vmatprep.subr.bf16.mxu0 %v3413_v28  ;;  %v3484_v18 = vld [vmem:[#allocation5 + $0x36c] ss:$24 sps:$4 sm:$0xff]   ;;  %v3482_v21 = vld [vmem:[#allocation5 + $0x368] ss:$24 sps:$4 sm:$0xff]   ;;  %v3490_v23 = vld [vmem:[#allocation5 + $0x39c] ss:$24 sps:$4 sm:$0xff]  }
  0xa7   : > { %1257 = vmatprep.subr.bf16.mxu1 %v3415_v29  ;;  %v3487_v22 = vld [vmem:[#allocation5 + $0x394] ss:$24 sps:$4 sm:$0xff]   ;;  %v3485_v25 = vld [vmem:[#allocation5 + $0x390] ss:$24 sps:$4 sm:$0xff]   ;;  %v3493_v27 = vld [vmem:[#allocation5 + $0x3c4] ss:$24 sps:$4 sm:$0xff]  }
  0xa8   : > { %v3488_v26 = vld [vmem:[#allocation5 + $0x398] ss:$24 sps:$4 sm:$0xff]   ;;  %v3496_v28 = vld [vmem:[#allocation5 + $0x3cc] ss:$24 sps:$4 sm:$0xff]   ;;  %v3883_v29 = vmov 0   ;;  %s3886_s12 = smov 96  }
  0xa9   : > { %1156 = vmatpush1.bf16.msra.mxu0 %v3417_v30  ;;  %v4153_v30 = vshrl.u32 %v1479_v24, 7  ;;  %v4167_v46 = vld [vmem:[#allocation7 + $0x8] sm:$0xff]  ;;  %v3518_v3 = vld [vmem:[#allocation5 + $0x40] ss:$24 sps:$4 sm:$0xff]   ;;  %vm1742_vm4 = vcmask 785408   ;;  %s3030_s13 = sshll.u32 %s4111_s11, 5 }
  0xaa   : > { %1258 = vmatpush1.bf16.msra.mxu1 %v3418_v31  ;;  %1157 = vmatprep.subr.bf16.mxu0 %v3419_v32  ;;  %v3491_v31 = vld [vmem:[#allocation5 + $0x3c0] ss:$24 sps:$4 sm:$0xff]   ;;  %v3511_v47 = vld [vmem:[#allocation5 + $0x454] ss:$24 sps:$4 sm:$0xff]   ;;  %s259_s6 = scalar_lea.vmem [#allocation10], %s3030_s13  ;;  %s3250_s8 = sshll.u32 %s3936_s19, 9 }
  0xab   : > { %1259 = vmatprep.subr.bf16.mxu1 %v3421_v33  ;;  %v3494_v32 = vld [vmem:[#allocation5 + $0x3c8] ss:$24 sps:$4 sm:$0xff]   ;;  %v3499_v33 = vld [vmem:[#allocation5 + $0x3f4] ss:$24 sps:$4 sm:$0xff]   ;;  %v2039_v16 = vsub.s32 2, %v4153_v30  ;;  %s2917_s28 = sshll.u32 %s259_s6, 4  ;;  %s5069_s26 = scalar_lea.hbm %s5117_s4, %s3250_s8  ;;  %s5064_s28 = int_to_ptr.vmem [resolvable:$true] %s2917_s28 }
  0xac   : > { %v270_v4 = vld [vmem:[%s4115_s7 + $0x40] sm:$0xff]  ;;  %s2903_s24 = scalar_lea.sflag [#allocation4], %s4111_s11  ;;  %s3797_s19 = scalar_lea.vmem %s5064_s28, 512 }
  0xad   : > { %1158 = vmatpush1.bf16.msra.mxu0 %v3423_v34  ;;  %v3502_v34 = vld [vmem:[#allocation5 + $0x3fc] ss:$24 sps:$4 sm:$0xff]   ;;  %v3530_v24 = vld [vmem:[#allocation5 + $0x100] ss:$24 sps:$4 sm:$0xff]   ;;  %p3798_p10 = scmp.ne.s32.totalorder %s5064_s28, %s3797_s19  ;;  %s3887_s9 = smov [#allocation10]  }
  0xae   : > { %1260 = vmatpush1.bf16.msra.mxu1 %v3424_v35  ;;  %1159 = vmatprep.subr.bf16.mxu0 %v3425_v36  ;;  %v4156_v35 = vsub.s32 4, %v4153_v30  ;;  %v3497_v36 = vld [vmem:[#allocation5 + $0x3f0] ss:$24 sps:$4 sm:$0xff]   ;;  %s3801_s20 = sshll.u32 %s3887_s9, 4  ;;  %s3802_s20 = int_to_ptr.vmem [resolvable:$false] %s3801_s20 }
  0xaf   : > { %1261 = vmatprep.subr.bf16.mxu1 %v3427_v37  ;;  %v3500_v37 = vld [vmem:[#allocation5 + $0x3f8] ss:$24 sps:$4 sm:$0xff]   ;;  %p3799_p3 = pnand %p3798_p10, %p4060_p5  ;;  %s3803_s27 = scalar_lea.vmem %s3802_s20, 1024 }
  0xb0   : > { %p3804_p12 = scmp.lt.s32.totalorder %s5064_s28, %s3802_s20  ;;  %p3805_p1 = scmp.lt.s32.totalorder %s3803_s27, %s3797_s19 }
  0xb1   : > { %1160 = vmatpush1.bf16.msra.mxu0 %v3429_v38  ;;  %v3505_v38 = vld [vmem:[#allocation5 + $0x424] ss:$24 sps:$4 sm:$0xff]   ;;  %p3800_p7 = pneg %p3799_p3 }
  0xb2   : > { %1262 = vmatpush1.bf16.msra.mxu1 %v3430_v39  ;;  %1161 = vmatprep.subr.bf16.mxu0 %v3431_v40  ;;  %v3508_v39 = vld [vmem:[#allocation5 + $0x42c] ss:$24 sps:$4 sm:$0xff]   ;;  %p3806_p2 = por %p3805_p1, %p3804_p12 }
  0xb3   : > { %1263 = vmatprep.subr.bf16.mxu1 %v3433_v41  ;;  %v4158_v40 = vld [vmem:[#allocation7] sm:$0xff] }
  0xb4   : > { %v3503_v41 = vld [vmem:[#allocation5 + $0x420] ss:$24 sps:$4 sm:$0xff]   ;;  %p3807_p4 = pnand %p3806_p2, %p3800_p7 }
  0xb5   : > { %1162 = vmatpush1.bf16.msra.mxu0 %v3435_v42  ;;  %v1770_v42 = vrot.slane %v4158_v40, %v4156_v35 }
  0xb6   : > { %1264 = vmatpush1.bf16.msra.mxu1 %v3436_v43  ;;  %1163 = vmatprep.subr.bf16.mxu0 %v3437_v44  ;;  %v4163_v43 = vsub.s32 1, %v4153_v30  ;;  %v3506_v44 = vld [vmem:[#allocation5 + $0x428] ss:$24 sps:$4 sm:$0xff]  }
  0xb7   : > { %1265 = vmatprep.subr.bf16.mxu1 %v3439_v45  ;;  %v4165_v45 = vld [vmem:[#allocation7 + $0x10] sm:$0xff]  ;;  %1787 = vrot.lane.b32.xlu0 %v1770_v42, %s3884_s21 }
  0xb9   : > { %1164 = vmatpush1.bf16.msra.mxu0 %v3441_v48  ;;  %v1778_v48 = vrot.slane %v4165_v45, %v4156_v35 }
  0xba   : > { %1266 = vmatpush1.bf16.msra.mxu1 %v3442_v49  ;;  %1165 = vmatprep.subr.bf16.mxu0 %v3443_v51  ;;  %v3514_v49 = vld [vmem:[#allocation5 + $0x45c] ss:$24 sps:$4 sm:$0xff]   ;;  %v3509_v51 = vld [vmem:[#allocation5 + $0x450] ss:$24 sps:$4 sm:$0xff]  }
  0xbb   : > { %1267 = vmatprep.subr.bf16.mxu1 %v3445_v52  ;;  %1791 = vrot.lane.b32.xlu1 %v1778_v48, %s3884_s21  ;;  %v1774_v52 = vrot.slane %v4167_v46, %v4156_v35  ;;  %v3545_v48 = vld [vmem:[#allocation5 + $0x1f0] ss:$24 sps:$4 sm:$0xff]  }
  0xbd   : > { %1166 = vmatpush1.bf16.msra.mxu0 %v3447_v53  ;;  %v1668_v53 = vrot.slane %v4158_v40, %v4163_v43  ;;  %1789 = vrot.lane.b32.xlu0 %v1774_v52, %s3884_s21  ;;  %v3553_v52 = vld [vmem:[#allocation5 + $0x254] ss:$24 sps:$4 sm:$0xff]  }
  0xbe   : > { %1268 = vmatpush1.bf16.msra.mxu1 %v3448_v54  ;;  %1167 = vmatprep.subr.bf16.mxu0 %v3449_v55  ;;  %v3512_v54 = vld [vmem:[#allocation5 + $0x458] ss:$24 sps:$4 sm:$0xff]   ;;  %v264_v55 = vld [vmem:[%s4115_s7 + $0x10] sm:$0xff] }
  0xbf   : > { %1269 = vmatprep.subr.bf16.mxu1 %v3451_v56  ;;  %v267_v56 = vld [vmem:[%s4115_s7 + $0x28] sm:$0xff]  ;;  %1685 = vrot.lane.b32.xlu1 %v1668_v53, %s3884_s21  ;;  %v3551_v53 = vld [vmem:[#allocation5 + $0x250] ss:$24 sps:$4 sm:$0xff]  }
  0xc1   : > { %1168 = vmatpush1.bf16.msra.mxu0 %v3453_v57  ;;  %v3517_v57 = vld [vmem:[#allocation5 + $0x14] ss:$24 sps:$4 sm:$0xff]  }
  0xc2   : > { %1270 = vmatpush1.bf16.msra.mxu1 %v3454_v58  ;;  %1169 = vmatprep.subr.bf16.mxu0 %v3455_v59  ;;  %v1672_v58 = vrot.slane %v4167_v46, %v4163_v43  ;;  %v1676_v59 = vrot.slane %v4165_v45, %v4163_v43 }
  0xc3   : > { %1271 = vmatprep.subr.bf16.mxu1 %v3457_v60  ;;  %v4186_v60 = vsub.s32 7, %v4153_v30 }
  0xc4   : > { %1687 = vrot.lane.b32.xlu0 %v1672_v58, %s3884_s21  ;;  %1689 = vrot.lane.b32.xlu1 %v1676_v59, %s3884_s21  ;;  %v3562_v58 = vld [vmem:[#allocation5 + $0x2e4] ss:$24 sps:$4 sm:$0xff]   ;;  %v3560_v59 = vld [vmem:[#allocation5 + $0x2e0] ss:$24 sps:$4 sm:$0xff]  }
  0xc5   : > { %1170 = vmatpush1.bf16.msra.mxu0 %v3459_v61  ;;  %v4188_v61 = vpack.c.bf16 %v267_v56, %v264_v55  ;;  %v1913_v8 = vrot.slane %v4165_v45, %v4186_v60  ;;  %v3554_v55 = vld [vmem:[#allocation5 + $0x280] ss:$24 sps:$4 sm:$0xff]   ;;  %v3559_v56 = vld [vmem:[#allocation5 + $0x2b4] ss:$24 sps:$4 sm:$0xff]  }
  0xc6   : > { %1272 = vmatpush1.bf16.msra.mxu1 %v3460_v62  ;;  %1171 = vmatprep.subr.bf16.mxu0 %v3461_v63  ;;  %v3515_v62 = vld [vmem:[#allocation5 + $0x10] ss:$24 sps:$4 sm:$0xff]   ;;  %v3520_v63 = vld [vmem:[#allocation5 + $0x44] ss:$24 sps:$4 sm:$0xff]  }
  0xc7   : > { %1273 = vmatprep.subr.bf16.mxu1 %v3463_v0  ;;  %v1905_v0 = vrot.slane %v4158_v40, %v4186_v60 }
  0xc9   : > { %1172 = vmatpush1.bf16.msra.mxu0 %v3465_v1  ;;  %v1909_v1 = vrot.slane %v4167_v46, %v4186_v60  ;;  %1922 = vrot.lane.b32.xlu0 %v1905_v0, %s3884_s21  ;;  %v3566_v0 = vld [vmem:[#allocation5 + $0x340] ss:$24 sps:$4 sm:$0xff]  }
  0xca   : > { %1274 = vmatpush1.bf16.msra.mxu1 %v3466_v2  ;;  %1192 = vmatprep.subr.bf16.mxu0 %v3469_v5  ;;  %v4197_v2 = vsub.s32 5, %v4153_v30  ;;  %v3523_v5 = vld [vmem:[#allocation5 + $0x74] ss:$24 sps:$4 sm:$0xff]  }
  0xcb   : > { %1294 = vmatprep.subr.bf16.mxu1 %v3472_v6  ;;  %v3521_v6 = vld [vmem:[#allocation5 + $0x70] ss:$24 sps:$4 sm:$0xff]   ;;  %1924 = vrot.lane.b32.xlu1 %v1909_v1, %s3884_s21  ;;  %v3571_v1 = vld [vmem:[#allocation5 + $0x374] ss:$24 sps:$4 sm:$0xff]  }
  0xcc   : > { %1174 = vmatmul.mubr.bf16.vlgmr.msra.gmra.mrb[0].mxu0 %v4137_v7 }
  0xcd   : > { %1276 = vmatmul.mubr.bf16.vlgmr.msra.gmra.mrb[0].mxu1 %v4137_v7  ;;  %1193 = vmatpush1.bf16.msra.mxu0 %v3467_v9  ;;  %v2141_v9 = vrot.slane %v4158_v40, %v4197_v2 }
  0xce   : > { %1295 = vmatpush1.bf16.msra.mxu1 %v3470_v10  ;;  %1194 = vmatprep.subr.bf16.mxu0 %v3475_v11  ;;  %v4210_v10 = vpack.c.bf16 %v270_v4, %v270_v4  ;;  %v3526_v11 = vld [vmem:[#allocation5 + $0xa4] ss:$24 sps:$4 sm:$0xff]   ;;  %v3572_v4 = vld [vmem:[#allocation5 + $0x3a0] ss:$24 sps:$4 sm:$0xff]  }
  0xcf   : > { %1296 = vmatprep.subr.bf16.mxu1 %v3478_v12  ;;  %1183 = vmatprep.mubr.bf16.mxu0 %v4140_v13  ;;  %v3524_v12 = vld [vmem:[#allocation5 + $0xa0] ss:$24 sps:$4 sm:$0xff]  }
  0xd0   : > { %1285 = vmatprep.mubr.bf16.mxu1 %v4140_v13  ;;  %1926 = vrot.lane.b32.xlu0 %v1913_v8, %s3884_s21  ;;  %v3583_v8 = vld [vmem:[#allocation5 + $0x434] ss:$24 sps:$4 sm:$0xff]  }
  0xd1   : > { %1195 = vmatpush1.bf16.msra.mxu0 %v3473_v14  ;;  %2158 = vrot.lane.b32.xlu1 %v2141_v9, %s3885_s23  ;;  %v2145_v14 = vrot.slane %v4167_v46, %v4197_v2  ;;  %v3581_v9 = vld [vmem:[#allocation5 + $0x430] ss:$24 sps:$4 sm:$0xff]  }
  0xd2   : > { %1297 = vmatpush1.bf16.msra.mxu1 %v3476_v15  ;;  %1196 = vmatprep.subr.bf16.mxu0 %v3481_v17  ;;  %v2149_v15 = vrot.slane %v4165_v45, %v4197_v2  ;;  %v3529_v17 = vld [vmem:[#allocation5 + $0xd4] ss:$24 sps:$4 sm:$0xff]  }
  0xd3   : > { %1298 = vmatprep.subr.bf16.mxu1 %v3484_v18  ;;  %v3527_v18 = vld [vmem:[#allocation5 + $0xd0] ss:$24 sps:$4 sm:$0xff]  }
  0xd4   : > { %1184 = vmatmul.mubr.bf16.gmra.mrb[4].mxu0 %v4147_v20  ;;  %2160 = vrot.lane.b32.xlu0 %v2145_v14, %s3885_s23 }
  0xd5   : > { %1286 = vmatmul.mubr.bf16.gmra.mrb[4].mxu1 %v4147_v20  ;;  %1197 = vmatpush1.bf16.msra.mxu0 %v3479_v19  ;;  %v2040_v19 = vrot.slane %v4158_v40, %v2039_v16 }
  0xd6   : > { %1299 = vmatpush1.bf16.msra.mxu1 %v3482_v21  ;;  %1198 = vmatprep.subr.bf16.mxu0 %v3487_v22  ;;  %v2044_v21 = vrot.slane %v4167_v46, %v2039_v16  ;;  %v3532_v22 = vld [vmem:[#allocation5 + $0x104] ss:$24 sps:$4 sm:$0xff]  }
  0xd7   : > { %1300 = vmatprep.subr.bf16.mxu1 %v3490_v23  ;;  %1224 = vmatprep.mubr.bf16.mxu0 %v3883_v29  ;;  %v3175_v23 = vld [vmem:[#allocation7 + $0x20] ss:$0 sm:$0xff] }
  0xd8   : > { %1326 = vmatprep.mubr.bf16.mxu1 %v3883_v29  ;;  %2162 = vrot.lane.b32.xlu1 %v2149_v15, %s3885_s23 }
  0xd9   : > { %1199 = vmatpush1.bf16.msra.mxu0 %v3485_v25  ;;  %2057 = vrot.lane.b32.xlu0 %v2040_v19, %s3885_s23  ;;  %v3535_v25 = vld [vmem:[#allocation5 + $0x134] ss:$24 sps:$4 sm:$0xff]  }
  0xda   : > { %1301 = vmatpush1.bf16.msra.mxu1 %v3488_v26  ;;  %1200 = vmatprep.subr.bf16.mxu0 %v3493_v27  ;;  %v3176_v26 = vld [vmem:[#allocation7 + $0x28] ss:$0 sm:$0xff]  ;;  %v3177_v27 = vld [vmem:[#allocation7 + $0x30] ss:$0 sm:$0xff] }
  0xdb   : > { %1302 = vmatprep.subr.bf16.mxu1 %v3496_v28  ;;  %v4229_v28 = vld [vmem:[#allocation7 + $0x18] sm:$0xff] }
  0xdc   : > { %2059 = vrot.lane.b32.xlu1 %v2044_v21, %s3885_s23  ;;  %v2052_v42 = vrot.slane %v4229_v28, %v2039_v16 }
  0xdd   : > { %1201 = vmatpush1.bf16.msra.mxu0 %v3491_v31  ;;  %v3533_v31 = vld [vmem:[#allocation5 + $0x130] ss:$24 sps:$4 sm:$0xff]  }
  0xde   : > { %1303 = vmatpush1.bf16.msra.mxu1 %v3494_v32  ;;  %1202 = vmatprep.subr.bf16.mxu0 %v3499_v33  ;;  %v3538_v32 = vld [vmem:[#allocation5 + $0x164] ss:$24 sps:$4 sm:$0xff]   ;;  %v1782_v33 = vrot.slane %v4229_v28, %v4156_v35 }
  0xdf   : > { %1304 = vmatprep.subr.bf16.mxu1 %v3502_v34  ;;  %v1680_v34 = vrot.slane %v4229_v28, %v4163_v43  ;;  %v3544_v35 = vld [vmem:[#allocation5 + $0x1c4] ss:$24 sps:$4 sm:$0xff]   ;;  %v3178_v43 = vld [vmem:[#allocation7 + $0x38] ss:$0 sm:$0xff] }
  0xe0   : > { %2293 = vrot.lane.b32.xlu1 %v3175_v23, %s3885_s23 }
  0xe1   : > { %1203 = vmatpush1.bf16.msra.mxu0 %v3497_v36  ;;  %v3536_v36 = vld [vmem:[#allocation5 + $0x160] ss:$24 sps:$4 sm:$0xff]  }
  0xe2   : > { %1305 = vmatpush1.bf16.msra.mxu1 %v3500_v37  ;;  %1204 = vmatprep.subr.bf16.mxu0 %v3505_v38  ;;  %v3541_v37 = vld [vmem:[#allocation5 + $0x194] ss:$24 sps:$4 sm:$0xff]   ;;  %v1917_v38 = vrot.slane %v4229_v28, %v4186_v60 }
  0xe3   : > { %1306 = vmatprep.subr.bf16.mxu1 %v3508_v39  ;;  %v2153_v39 = vrot.slane %v4229_v28, %v4197_v2  ;;  %v3565_v60 = vld [vmem:[#allocation5 + $0x314] ss:$24 sps:$4 sm:$0xff]   ;;  %v3569_v2 = vld [vmem:[#allocation5 + $0x370] ss:$24 sps:$4 sm:$0xff]  }
  0xe4   : > { %2297 = vrot.lane.b32.xlu1 %v3177_v27, %s3885_s23 }
  0xe5   : > { %1205 = vmatpush1.bf16.msra.mxu0 %v3503_v41  ;;  %v3539_v41 = vld [vmem:[#allocation5 + $0x190] ss:$24 sps:$4 sm:$0xff]  }
  0xe6   : > { %1307 = vmatpush1.bf16.msra.mxu1 %v3506_v44  ;;  %1206 = vmatprep.subr.bf16.mxu0 %v3511_v47  ;;  %v3542_v44 = vld [vmem:[#allocation5 + $0x1c0] ss:$24 sps:$4 sm:$0xff]   ;;  %v3547_v47 = vld [vmem:[#allocation5 + $0x1f4] ss:$24 sps:$4 sm:$0xff]  }
  0xe7   : > { %1308 = vmatprep.subr.bf16.mxu1 %v3514_v49  ;;  %v3550_v49 = vld [vmem:[#allocation5 + $0x224] ss:$24 sps:$4 sm:$0xff]  }
  0xe8   : > { %1691 = vrot.lane.b32.xlu1 %v1680_v34, %s3884_s21 }
  0xe9   : > { %1207 = vmatpush1.bf16.msra.mxu0 %v3509_v51  ;;  %v3548_v51 = vld [vmem:[#allocation5 + $0x220] ss:$24 sps:$4 sm:$0xff]  }
  0xea   : > { %1309 = vmatpush1.bf16.msra.mxu1 %v3512_v54  ;;  %1345 = vmatprep.subr.bf16.mxu0 %v3517_v57  ;;  %v3556_v54 = vld [vmem:[#allocation5 + $0x284] ss:$24 sps:$4 sm:$0xff]   ;;  %v3557_v57 = vld [vmem:[#allocation5 + $0x2b0] ss:$24 sps:$4 sm:$0xff]  }
  0xec   : > { %1225 = vmatmul.mubr.bf16.vlgmr.msra.gmra.mrb[0].mxu0 %v4188_v61  ;;  %2164 = vrot.lane.b32.xlu1 %v2153_v39, %s3885_s23 }
  0xed   : > { %1327 = vmatmul.mubr.bf16.vlgmr.msra.gmra.mrb[0].mxu1 %v4188_v61  ;;  %1346 = vmatpush1.bf16.msra.mxu0 %v3515_v62  ;;  %v3563_v62 = vld [vmem:[#allocation5 + $0x310] ss:$24 sps:$4 sm:$0xff]  }
  0xee   : > { %1234 = vmatprep.mubr.bf16.mxu0 %v3883_v29  ;;  %1347 = vmatprep.subr.bf16.mxu0 %v3520_v63  ;;  %v3568_v63 = vld [vmem:[#allocation5 + $0x344] ss:$24 sps:$4 sm:$0xff]  }
  0xef   : > { %1336 = vmatprep.mubr.bf16.mxu1 %v3883_v29 }
  0xf0   : > { %2299 = vrot.lane.b32.xlu1 %v3178_v43, %s3885_s23 }
  0xf1   : > { %1348 = vmatpush1.bf16.msra.mxu0 %v3518_v3  ;;  %v3574_v3 = vld [vmem:[#allocation5 + $0x3a4] ss:$24 sps:$4 sm:$0xff]  }
  0xf2   : > { %1349 = vmatprep.subr.bf16.mxu0 %v3523_v5  ;;  %v3577_v5 = vld [vmem:[#allocation5 + $0x3d4] ss:$24 sps:$4 sm:$0xff]  }
  0xf4   : > { %1235 = vmatmul.mubr.bf16.gmra.mrb[4].mxu0 %v4210_v10 }
  0xf5   : > { %1337 = vmatmul.mubr.bf16.gmra.mrb[4].mxu1 %v4210_v10  ;;  %1350 = vmatpush1.bf16.msra.mxu0 %v3521_v6  ;;  %v3580_v6 = vld [vmem:[#allocation5 + $0x404] ss:$24 sps:$4 sm:$0xff]  }
  0xf6   : > { %1377 = vmatprep.mubr.bf16.mxu0 %v4131_v50  ;;  %1351 = vmatprep.subr.bf16.mxu0 %v3526_v11  ;;  %v2048_v50 = vrot.slane %v4165_v45, %v2039_v16  ;;  %v3586_v11 = vld [vmem:[#allocation5 + $0x464] ss:$24 sps:$4 sm:$0xff]  }
  0xf8   : > { %2061 = vrot.lane.b32.xlu0 %v2048_v50, %s3885_s23 }
  0xf9   : > { %1352 = vmatpush1.bf16.msra.mxu0 %v3524_v12 }
  0xfa   : > { %1353 = vmatprep.subr.bf16.mxu0 %v3529_v17 }
  0xfc   : > { %2295 = vrot.lane.b32.xlu0 %v3176_v26, %s3885_s23 }
  0xfd   : > { %1354 = vmatpush1.bf16.msra.mxu0 %v3527_v18 }
  0xfe   : > { %1355 = vmatprep.subr.bf16.mxu0 %v3532_v22 }
 0x100   : > { %1793 = vrot.lane.b32.xlu0 %v1782_v33, %s3884_s21 }
 0x101   : > { %1356 = vmatpush1.bf16.msra.mxu0 %v3530_v24 }
 0x102   : > { %1357 = vmatprep.subr.bf16.mxu0 %v3535_v25 }
 0x104   : > { %1928 = vrot.lane.b32.xlu0 %v1917_v38, %s3884_s21  ;;  %v1481_v38 = vsub.s32 0, %v4153_v30 }
 0x105   : > { %1358 = vmatpush1.bf16.msra.mxu0 %v3533_v31 }
 0x106   : > { %1359 = vmatprep.subr.bf16.mxu0 %v3538_v32 }
 0x108   : > { %2063 = vrot.lane.b32.xlu0 %v2052_v42, %s3885_s23 }
 0x109   : > { %1360 = vmatpush1.bf16.msra.mxu0 %v3536_v36 }
 0x10a   : > { %1361 = vmatprep.subr.bf16.mxu0 %v3541_v37 }
 0x10d   : > { %1362 = vmatpush1.bf16.msra.mxu0 %v3539_v41  ;;  %v1513_v41 = vsub.s32 3, %v4153_v30 }
 0x10e   : > { %1363 = vmatprep.subr.bf16.mxu0 %v3544_v35  ;;  %v1590_v35 = vsub.s32 6, %v4153_v30  ;;  %v4311_v30 = vrot.slane %v4158_v40, %v1481_v38 }
 0x111   : > { %1364 = vmatpush1.bf16.msra.mxu0 %v3542_v44 }
 0x112   : > { %1365 = vmatprep.subr.bf16.mxu0 %v3547_v47 }
 0x115   : > { %1366 = vmatpush1.bf16.msra.mxu0 %v3545_v48 }
 0x116   : > { %1367 = vmatprep.subr.bf16.mxu0 %v3550_v49 }
 0x119   : > { %1368 = vmatpush1.bf16.msra.mxu0 %v3548_v51  ;;  %v4317_v51 = vrot.slane %v4167_v46, %v1481_v38 }
 0x11a   : > { %1369 = vmatprep.subr.bf16.mxu0 %v3553_v52  ;;  %v4320_v52 = vrot.slane %v4158_v40, %v1513_v41 }
 0x11b   : > { %5165 = vst [vmem:[#allocation19_spill] sm:$0xff] %v4317_v51 }
 0x11c   : > { %5166 = vst [vmem:[#allocation20_spill] sm:$0xff] %v4320_v52 }
 0x11d   : > { %1370 = vmatpush1.bf16.msra.mxu0 %v3551_v53  ;;  %v4323_v53 = vrot.slane %v4158_v40, %v1590_v35 }
 0x11e   : > { %1371 = vmatprep.subr.bf16.mxu0 %v3556_v54 }
 0x11f   : > { %5167 = vst [vmem:[#allocation21_spill] sm:$0xff] %v4323_v53  ;;  %v3601_v53 = vld [vmem:[#allocation8 + $0x44] ss:$8 sps:$4 sm:$0xff]  }
 0x121   : > { %1372 = vmatpush1.bf16.msra.mxu0 %v3554_v55 }
 0x122   : > { %1373 = vmatprep.subr.bf16.mxu0 %v3559_v56  ;;  %v4333_v56 = vrot.slane %v4167_v46, %v1513_v41 }
 0x124   : > { %5168 = vst [vmem:[#allocation22_spill] sm:$0xff] %v4333_v56 }
 0x125   : > { %1374 = vmatpush1.bf16.msra.mxu0 %v3557_v57  ;;  %v4336_v57 = vrot.slane %v4167_v46, %v1590_v35 }
 0x126   : > { %1375 = vmatprep.subr.bf16.mxu0 %v3562_v58 }
 0x127   : > { %5169 = vst [vmem:[#allocation23_spill] sm:$0xff] %v4336_v57 }
 0x129   : > { %1376 = vmatpush1.bf16.msra.mxu0 %v3560_v59  ;;  %v4257_v12 = vpop.permute.xlu0 %1787 }
 0x12a   : > { %1393 = vmatprep.subr.bf16.mxu0 %v3565_v60 }
 0x12c   : > { %1378 = vmatmul.mubr.bf16.vlgmr.msra.gmra.mrb[8].mxu0 %v4137_v7  ;;  %v3575_v7 = vld [vmem:[#allocation5 + $0x3d0] ss:$24 sps:$4 sm:$0xff]  }
 0x12d   : > { %1394 = vmatpush1.bf16.msra.mxu0 %v3563_v62  ;;  %1385 = vmatprep.mubr.bf16.mxu0 %v4140_v13  ;;  %v3578_v13 = vld [vmem:[#allocation5 + $0x400] ss:$24 sps:$4 sm:$0xff]   ;;  %v1792_v14 = vpop.permute.xlu1 %1791  ;;  %v4346_v62 = vrot.slane %v4165_v45, %v1481_v38 }
 0x12e   : > { %1395 = vmatprep.subr.bf16.mxu0 %v3568_v63  ;;  %v4349_v63 = vrot.slane %v4165_v45, %v1513_v41 }
 0x12f   : > { %v1790_v15 = vpop.permute.xlu0 %1789  ;;  %5172 = vst [vmem:[#allocation26_spill] sm:$0xff] %v4346_v62 }
 0x130   : > { %v4294_v42 = vsel %vm1693_vm0, %v4257_v12, %v1790_v15  ;;  %v4297_v43 = vsel %vm1693_vm0, %v1790_v15, %v1792_v14  ;;  %5173 = vst [vmem:[#allocation27_spill] sm:$0xff] %v4349_v63 }
 0x131   : > { %1396 = vmatpush1.bf16.msra.mxu0 %v3566_v0  ;;  %v4259_v16 = vpop.permute.xlu1 %1685 }
 0x132   : > { %1397 = vmatprep.subr.bf16.mxu0 %v3571_v1 }
 0x134   : > { %1386 = vmatmul.mubr.bf16.gmra.mrb[12].mxu0 %v4147_v20  ;;  %v3584_v20 = vld [vmem:[#allocation5 + $0x460] ss:$24 sps:$4 sm:$0xff]  }
 0x135   : > { %1398 = vmatpush1.bf16.msra.mxu0 %v3569_v2  ;;  %1425 = vmatprep.mubr.bf16.mxu0 %v3883_v29 }
 0x136   : > { %1399 = vmatprep.subr.bf16.mxu0 %v3574_v3  ;;  %v1688_v17 = vpop.permute.xlu0 %1687  ;;  %v1690_v18 = vpop.permute.xlu1 %1689  ;;  %v4359_v3 = vrot.slane %v4165_v45, %v1590_v35 }
 0x137   : > { %v4301_v44 = vsel %vm1693_vm0, %v4259_v16, %v1688_v17  ;;  %v4304_v47 = vsel %vm1693_vm0, %v1688_v17, %v1690_v18 }
 0x138   : > { %5174 = vst [vmem:[#allocation28_spill] sm:$0xff] %v4359_v3 }
 0x139   : > { %1400 = vmatpush1.bf16.msra.mxu0 %v3572_v4  ;;  %v4362_v4 = vrot.slane %v4229_v28, %v1481_v38 }
 0x13a   : > { %1401 = vmatprep.subr.bf16.mxu0 %v3577_v5 }
 0x13b   : > { %v4261_v19 = vpop.permute.xlu0 %1922  ;;  %5175 = vst [vmem:[#allocation29_spill] sm:$0xff] %v4362_v4 }
 0x13d   : > { %1402 = vmatpush1.bf16.msra.mxu0 %v3575_v7  ;;  %v1925_v21 = vpop.permute.xlu1 %1924 }
 0x13e   : > { %1403 = vmatprep.subr.bf16.mxu0 %v3580_v6  ;;  %v4308_v48 = vsel %vm1693_vm0, %v4261_v19, %v1925_v21 }
 0x141   : > { %1404 = vmatpush1.bf16.msra.mxu0 %v3578_v13 }
 0x142   : > { %1405 = vmatprep.subr.bf16.mxu0 %v3583_v8  ;;  %v1927_v22 = vpop.permute.xlu0 %1926  ;;  %v4365_v8 = vrot.slane %v4229_v28, %v1513_v41 }
 0x143   : > { %v4263_v23 = vpop.permute.xlu1 %2158  ;;  %v4314_v49 = vsel %vm1693_vm0, %v1925_v21, %v1927_v22 }
 0x144   : > { %5176 = vst [vmem:[#allocation30_spill] sm:$0xff] %v4365_v8 }
 0x145   : > { %1406 = vmatpush1.bf16.msra.mxu0 %v3581_v9  ;;  %v4368_v9 = vrot.slane %v4229_v28, %v1590_v35 }
 0x146   : > { %1407 = vmatprep.subr.bf16.mxu0 %v3586_v11  ;;  %v2161_v24 = vpop.permute.xlu0 %2160 }
 0x147   : > { %v4327_v54 = vsel %vm2065_vm1, %v4263_v23, %v2161_v24  ;;  %5177 = vst [vmem:[#allocation31_spill] sm:$0xff] %v4368_v9 }
 0x149   : > { %1408 = vmatpush1.bf16.msra.mxu0 %v3584_v20 }
 0x14b   : > { %v4265_v50 = vpop.permute.xlu0 %2057 }
 0x14c   : > { %1426 = vmatmul.mubr.bf16.vlgmr.msra.gmra.mrb[8].mxu0 %v4188_v61  ;;  %v2163_v61 = vpop.permute.xlu1 %2162 }
 0x14d   : > { %1433 = vmatprep.mubr.bf16.mxu0 %v3883_v29  ;;  %v4330_v55 = vsel %vm2065_vm1, %v2161_v24, %v2163_v61 }
 0x150   : > { %v2060_v29 = vpop.permute.xlu1 %2059 }
 0x151   : > { %v2066_v58 = vsel %vm2065_vm1, %v4265_v50, %v2060_v29 }
 0x154   : > { %1434 = vmatmul.mubr.bf16.gmra.mrb[12].mxu0 %v4210_v10  ;;  %v4267_v25 = vpop.permute.xlu1 %2293 }
 0x158   : > { %v2298_v27 = vpop.permute.xlu1 %2297 }
 0x15c   : > { %v4271_v32 = vpop.permute.xlu1 %1691 }
 0x15d   : > { %5162 = vst [vmem:[#allocation16_spill] sm:$0xff] %v4271_v32  ;;  %v4279_v34 = vsel %vm1693_vm0, %v1690_v18, %v4271_v32 }
 0x160   : > { %v4288_v39 = vpop.permute.xlu1 %2164 }
 0x161   : > { %5164 = vst [vmem:[#allocation18_spill] sm:$0xff] %v4288_v39  ;;  %v4372_v11 = vsel %vm2065_vm1, %v2163_v61, %v4288_v39  ;;  %v3590_v39 = vld [vmem:[#allocation8 + $0x10] ss:$8 sps:$4 sm:$0xff]  }
 0x164   : > { %v4343_v60 = vpop.permute.xlu1 %2299 }
 0x165   : > { %5171 = vst [vmem:[#allocation25_spill] sm:$0xff] %v4343_v60  ;;  %v4386_v41 = vsel %vm2065_vm1, %v2298_v27, %v4343_v60 }
 0x16a   : > { %v2062_v10 = vpop.permute.xlu0 %2061 }
 0x16b   : > { %v2067_v59 = vsel %vm2065_vm1, %v2060_v29, %v2062_v10 }
 0x16e   : > { %v2296_v26 = vpop.permute.xlu0 %2295 }
 0x16f   : > { %v4353_v0 = vsel %vm2065_vm1, %v4267_v25, %v2296_v26  ;;  %v4356_v46 = vsel %vm2065_vm1, %v2296_v26, %v2298_v27 }
 0x172   : > { %v4269_v31 = vpop.permute.xlu0 %1793 }
 0x173   : > { %5161 = vst [vmem:[#allocation15_spill] sm:$0xff] %v4269_v31  ;;  %v4275_v33 = vsel %vm1693_vm0, %v1792_v14, %v4269_v31 }
 0x176   : > { %v4281_v36 = vpop.permute.xlu0 %1928 }
 0x177   : > { %5163 = vst [vmem:[#allocation17_spill] sm:$0xff] %v4281_v36  ;;  %v4285_v37 = vsel %vm1693_vm0, %v1927_v22, %v4281_v36 }
 0x17a   : > { %v4341_v40 = vpop.permute.xlu0 %2063 }
 0x17b   : > { %5170 = vst [vmem:[#allocation24_spill] sm:$0xff] %v4341_v40  ;;  %v4376_v17 = vsel %vm2065_vm1, %v2062_v10, %v4341_v40 }
 0x1bf   : > { %v1226_v1 = vpop.f32.mrb[0].mxu0 }
 0x1c0   : > { %v1328_v2 = vpop.f32.mrb[0].mxu1  ;;  %v1441_v5 = vmax.f32 %v1226_v1, 0.0  ;;  %v1228_v6 = vpop.f32.mrb[1].mxu0 }
 0x1c1   : > { %v1443_v7 = vmax.f32 %v1328_v2, 0.0  ;;  %v1330_v13 = vpop.f32.mrb[1].mxu1  ;;  %v1442_v20 = vmax.f32 %v1228_v6, 0.0  ;;  %v1230_v14 = vpop.f32.mrb[2].mxu0 }
 0x1c2   : > { %v1444_v45 = vmax.f32 %v1330_v13, 0.0  ;;  %v1332_v15 = vpop.f32.mrb[2].mxu1  ;;  %v4378_v18 = vmin.f32 %v1441_v5, 6.0  ;;  %v1446_v22 = vmax.f32 %v1230_v14, 0.0  ;;  %v1232_v28 = vpop.f32.mrb[3].mxu0 }
 0x1c3   : > { %v4380_v21 = vmin.f32 %v1443_v7, 6.0  ;;  %v1448_v24 = vmax.f32 %v1332_v15, 0.0  ;;  %v1334_v29 = vpop.f32.mrb[3].mxu1  ;;  %v4382_v26 = vmin.f32 %v1442_v20, 6.0  ;;  %v1447_v61 = vmax.f32 %v1232_v28, 0.0 }
 0x1c4   : > { %v1449_v38 = vmax.f32 %v1334_v29, 0.0  ;;  %v4388_v35 = vmin.f32 %v1446_v22, 6.0  ;;  %v1702_v2 = vmul.f32 %v4259_v16, %v4378_v18  ;;  %v3587_v5 = vld [vmem:[#allocation8] ss:$8 sps:$4 sm:$0xff]   ;;  %v3589_v7 = vld [vmem:[#allocation8 + $0x4] ss:$8 sps:$4 sm:$0xff]   ;;  %v2074_v27 = vmul.f32 %v4265_v50, %v4378_v18 }
 0x1c5   : > { %v4390_v10 = vmin.f32 %v1448_v24, 6.0  ;;  %v1704_v1 = vmul.f32 %v4304_v47, %v4380_v21  ;;  %v4396_v6 = vmin.f32 %v1444_v45, 6.0  ;;  %v4398_v13 = vmin.f32 %v1447_v61, 6.0  ;;  %2812 = vmatprep.subr.bf16.mxu1 %v3589_v7 }
 0x1c6   : > { %v2076_v20 = vmul.f32 %v2067_v59, %v4380_v21  ;;  %v4403_v14 = vmin.f32 %v1449_v38, 6.0  ;;  %1722 = vrot.lane.b32.xlu0 %v1702_v2, %s3886_s12  ;;  %v2075_v15 = vmul.f32 %v2066_v58, %v4382_v26  ;;  %v1703_v45 = vmul.f32 %v4301_v44, %v4382_v26  ;;  %2813 = vmatpush1.bf16.msra.mxu1 %v3587_v5 }
 0x1c7   : > { %1726 = vrot.lane.b32.xlu1 %v1704_v1, %s3886_s12  ;;  %v4412_v22 = vmul.f32 %v4304_v47, %v4390_v10  ;;  %v1236_v24 = vpop.f32.mrb[4].mxu0  ;;  %v4415_v29 = vmul.f32 %v2067_v59, %v4390_v10  ;;  %v4419_v61 = vmul.f32 %v4265_v50, %v4388_v35  ;;  %v4423_v38 = vmul.f32 %v4259_v16, %v4388_v35 }
 0x1c8   : > { %v1338_v28 = vpop.f32.mrb[4].mxu1  ;;  %v4426_v1 = vmul.f32 %v2066_v58, %v4398_v13  ;;  %v1451_v2 = vmax.f32 %v1236_v24, 0.0  ;;  %v1238_v40 = vpop.f32.mrb[5].mxu0  ;;  %v4430_v59 = vmul.f32 %v4301_v44, %v4398_v13  ;;  %v1805_v50 = vmul.f32 %v4297_v43, %v4380_v21  ;;  %v3592_v24 = vld [vmem:[#allocation8 + $0x14] ss:$8 sps:$4 sm:$0xff]  }
 0x1c9   : > { %v1453_v47 = vmax.f32 %v1338_v28, 0.0  ;;  %v1340_v60 = vpop.f32.mrb[5].mxu1  ;;  %v1452_v36 = vmax.f32 %v1238_v40, 0.0  ;;  %v1240_v31 = vpop.f32.mrb[6].mxu0  ;;  %v4436_v58 = vmul.f32 %v4297_v43, %v4390_v10  ;;  %v1803_v7 = vmul.f32 %v4257_v12, %v4378_v18  ;;  %2814 = vmatprep.subr.bf16.mxu1 %v3592_v24 }
 0x1ca   : > { %v1454_v16 = vmax.f32 %v1340_v60, 0.0  ;;  %v1342_v32 = vpop.f32.mrb[6].mxu1  ;;  %v4440_v28 = vmin.f32 %v1451_v2, 6.0  ;;  %2098 = vrot.lane.b32.xlu0 %v2076_v20, %s3885_s23  ;;  %v1241_v40 = vpop.f32.mrb[7].mxu0  ;;  %v1839_v31 = vrot.slane %v1805_v50, 1  ;;  %v4460_v20 = vmul.f32 %v4261_v19, %v4388_v35  ;;  %2815 = vmatpush1.bf16.msra.mxu1 %v3590_v39 }
 0x1cb   : > { %v4442_v44 = vmin.f32 %v1453_v47, 6.0  ;;  %v1343_v9 = vpop.f32.mrb[7].mxu1  ;;  %2094 = vrot.lane.b32.xlu1 %v2074_v27, %s3885_s23  ;;  %v4448_v32 = vmul.f32 %v4257_v12, %v4388_v35  ;;  %v4450_v60 = vmin.f32 %v1452_v36, 6.0  ;;  %v5135_v2 = vrot.slane %v4436_v58, 1 }
 0x1cc   : > { %v4452_v5 = vmin.f32 %v1454_v16, 6.0  ;;  %v1833_v8 = vrot.slane %v1803_v7, 1  ;;  %v1938_v27 = vmul.f32 %v4261_v19, %v4378_v18  ;;  %v1940_v47 = vmul.f32 %v4314_v49, %v4380_v21 }
 0x1cd   : > { %v5140_v9 = vrot.slane %v4448_v32, 1  ;;  %v4467_v36 = vsel %vm1551_vm2, %v1839_v31, %v5135_v2  ;;  %v1945_v50 = vmul.f32 %v4314_v49, %v4390_v10  ;;  %v2174_v16 = vmul.f32 %v4263_v23, %v4378_v18  ;;  %v3593_v2 = vld [vmem:[#allocation8 + $0x20] ss:$8 sps:$4 sm:$0xff]  }
 0x1ce   : > { %v4475_v7 = vmul.f32 %v4263_v23, %v4388_v35  ;;  %1724 = vrot.lane.b32.xlu0 %v1703_v45, %s3886_s12  ;;  %v1968_v24 = vrot.slane %v1938_v27, 2  ;;  %v1969_v40 = vrot.slane %v4460_v20, 2  ;;  %v1974_v31 = vrot.slane %v1940_v47, 2  ;;  %v3598_v47 = vld [vmem:[#allocation8 + $0x34] ss:$8 sps:$4 sm:$0xff]  }
 0x1cf   : > { %2096 = vrot.lane.b32.xlu1 %v2075_v15, %s3885_s23  ;;  %v4482_v39 = vsel %vm1551_vm2, %v1833_v8, %v5140_v9  ;;  %v1975_v4 = vrot.slane %v1945_v50, 2  ;;  %v2204_v3 = vrot.slane %v2174_v16, 1  ;;  %v2176_v62 = vmul.f32 %v4330_v55, %v4380_v21  ;;  %v3595_v15 = vld [vmem:[#allocation8 + $0x24] ss:$8 sps:$4 sm:$0xff]  }
 0x1d0   : > { %v5144_v63 = vrot.slane %v4475_v7, 1  ;;  %v4489_v45 = vsel %vm1628_vm3, %v1968_v24, %v1969_v40  ;;  %v2181_v8 = vmul.f32 %v4330_v55, %v4390_v10  ;;  %v1939_v27 = vmul.f32 %v4308_v48, %v4382_v26  ;;  %2816 = vmatprep.subr.bf16.mxu1 %v3595_v15 }
 0x1d1   : > { %v4497_v20 = vmul.f32 %v4308_v48, %v4398_v13  ;;  %v4500_v50 = vsel %vm1628_vm3, %v1974_v31, %v1975_v4  ;;  %v2210_v24 = vrot.slane %v2176_v62, 1  ;;  %v1804_v9 = vmul.f32 %v4294_v42, %v4382_v26  ;;  %2817 = vmatpush1.bf16.msra.mxu1 %v3593_v2 }
 0x1d2   : > { %v4505_v16 = vsel %vm1551_vm2, %v2204_v3, %v5144_v63  ;;  %2108 = vrot.lane.b32.xlu0 %v4415_v29, %s3885_s23  ;;  %v2211_v57 = vrot.slane %v2181_v8, 1  ;;  %v1971_v56 = vrot.slane %v1939_v27, 2  ;;  %v4516_v51 = vmul.f32 %v4294_v42, %v4398_v13  ;;  %v3596_v29 = vld [vmem:[#allocation8 + $0x30] ss:$8 sps:$4 sm:$0xff]   ;;  %2818 = vmatprep.subr.bf16.mxu1 %v3598_v47 }
 0x1d3   : > { %1736 = vrot.lane.b32.xlu1 %v4412_v22, %s3886_s12  ;;  %v1972_v31 = vrot.slane %v4497_v20, 2  ;;  %v1836_v3 = vrot.slane %v1804_v9, 1  ;;  %v2175_v62 = vmul.f32 %v4327_v54, %v4382_v26  ;;  %v4522_v15 = vmul.f32 %v4327_v54, %v4398_v13 }
 0x1d4   : > { %v1950_v22 = vmul.f32 %v4314_v49, %v4442_v44  ;;  %v4527_v8 = vsel %vm1551_vm2, %v2210_v24, %v2211_v57  ;;  %v1837_v9 = vrot.slane %v4516_v51, 1  ;;  %v1815_v63 = vmul.f32 %v4297_v43, %v4442_v44 }
 0x1d5   : > { %v4532_v27 = vsel %vm1628_vm3, %v1971_v56, %v1972_v31  ;;  %v2207_v52 = vrot.slane %v2175_v62, 1  ;;  %v2208_v49 = vrot.slane %v4522_v15, 1  ;;  %v1948_v24 = vmul.f32 %v4261_v19, %v4440_v28  ;;  %2819 = vmatpush1.bf16.msra.mxu1 %v3596_v29 }
 0x1d6   : > { %v1987_v2 = vrot.slane %v1950_v22, 2  ;;  %2104 = vrot.lane.b32.xlu0 %v4419_v61, %s3885_s23  ;;  %v4545_v51 = vsel %vm1551_vm2, %v1836_v3, %v1837_v9  ;;  %v1852_v56 = vrot.slane %v1815_v63, 1  ;;  %v2186_v43 = vmul.f32 %v4330_v55, %v4442_v44  ;;  %v3599_v3 = vld [vmem:[#allocation8 + $0x40] ss:$8 sps:$4 sm:$0xff]   ;;  %2820 = vmatprep.subr.bf16.mxu1 %v3601_v53 }
 0x1d7   : > { %1732 = vrot.lane.b32.xlu1 %v4423_v38, %s3886_s12  ;;  %v1813_v47 = vmul.f32 %v4257_v12, %v4440_v28  ;;  %v4552_v62 = vsel %vm1551_vm2, %v2207_v52, %v2208_v49  ;;  %v1983_v61 = vrot.slane %v1948_v24, 2  ;;  %v2184_v38 = vmul.f32 %v4263_v23, %v4440_v28  ;;  %v3604_v52 = vld [vmem:[#allocation8 + $0x54] ss:$8 sps:$4 sm:$0xff]  }
 0x1d8   : > { %v4555_v19 = vsel %vm1628_vm3, %v1975_v4, %v1987_v2  ;;  %v5178_v63 = vrot.slane %v4436_v58, 1  ;;  %v2223_v55 = vrot.slane %v2186_v43, 1  ;;  %v2311_v12 = vmul.f32 %v4356_v46, %v4380_v21 }
 0x1d9   : > { %v1848_v22 = vrot.slane %v1813_v47, 1  ;;  %v4567_v4 = vsel %vm1628_vm3, %v1969_v40, %v1983_v61  ;;  %v2219_v2 = vrot.slane %v2184_v38, 1  ;;  %v2316_v23 = vmul.f32 %v4356_v46, %v4390_v10  ;;  %2821 = vmatpush1.bf16.msra.mxu1 %v3599_v3 }
 0x1da   : > { %v4562_v15 = vsel %vm1551_vm2, %v5178_v63, %v1852_v56  ;;  %v2321_v58 = vmul.f32 %v4356_v46, %v4442_v44  ;;  %1734 = vrot.lane.b32.xlu0 %v4430_v59, %s3886_s12  ;;  %v4578_v29 = vsel %vm1551_vm2, %v2211_v57, %v2223_v55  ;;  %v5179_v53 = vrot.slane %v4448_v32, 1  ;;  %v3602_v59 = vld [vmem:[#allocation8 + $0x50] ss:$8 sps:$4 sm:$0xff]   ;;  %2822 = vmatprep.subr.bf16.mxu1 %v3604_v52 }
 0x1db   : > { %2106 = vrot.lane.b32.xlu1 %v4426_v1, %s3885_s23  ;;  %v2345_v24 = vrot.slane %v2311_v12, 2  ;;  %v1814_v56 = vmul.f32 %v4294_v42, %v4450_v60  ;;  %v5180_v46 = vrot.slane %v4475_v7, 1  ;;  %v2346_v1 = vrot.slane %v2316_v23, 2  ;;  %v3605_v23 = vld [vmem:[#allocation8 + $0x60] ss:$8 sps:$4 sm:$0xff]  }
 0x1dc   : > { %v4583_v40 = vsel %vm1551_vm2, %v5179_v53, %v1848_v22  ;;  %v2358_v47 = vrot.slane %v2321_v58, 2  ;;  %v1949_v57 = vmul.f32 %v4308_v48, %v4450_v60  ;;  %v2310_v61 = vmul.f32 %v4353_v0, %v4382_v26  ;;  %v3607_v58 = vld [vmem:[#allocation8 + $0x64] ss:$8 sps:$4 sm:$0xff]  }
 0x1dd   : > { %v4590_v43 = vsel %vm1551_vm2, %v5180_v46, %v2219_v2  ;;  %v1850_v32 = vrot.slane %v1814_v56, 1  ;;  %v2315_v38 = vmul.f32 %v4353_v0, %v4398_v13  ;;  %v2185_v42 = vmul.f32 %v4327_v54, %v4450_v60  ;;  %2823 = vmatpush1.bf16.msra.mxu1 %v3602_v59 }
 0x1de   : > { %v4601_v7 = vsel %vm1628_vm3, %v2345_v24, %v2346_v1  ;;  %v4604_v63 = vsel %vm1628_vm3, %v2346_v1, %v2358_v47  ;;  %v1985_v48 = vrot.slane %v1949_v57, 2  ;;  %v2320_v3 = vmul.f32 %v4353_v0, %v4450_v60  ;;  %1858 = vrot.lane.b32.xlu0 %v4482_v39, %s3886_s12  ;;  %2824 = vmatprep.subr.bf16.mxu1 %v3607_v58 }
 0x1df   : > { %1862 = vrot.lane.b32.xlu1 %v4467_v36, %s3886_s12  ;;  %v4613_v55 = vsel %vm1551_vm2, %v1837_v9, %v1850_v32  ;;  %v2342_v54 = vrot.slane %v2310_v61, 2  ;;  %v2343_v22 = vrot.slane %v2315_v38, 2  ;;  %v2221_v12 = vrot.slane %v2185_v42, 1  ;;  %v3608_v42 = vld [vmem:[#allocation8 + $0x70] ss:$8 sps:$4 sm:$0xff]  }
 0x1e0   : > { %v4618_v52 = vsel %vm1628_vm3, %v1972_v31, %v1985_v48  ;;  %v2356_v2 = vrot.slane %v2320_v3, 2  ;;  %v2314_v0 = vmul.f32 %v4267_v25, %v4388_v35  ;;  %v2319_v36 = vmul.f32 %v4267_v25, %v4440_v28 }
 0x1e1   : > { %v4625_v39 = vsel %vm1628_vm3, %v2342_v54, %v2343_v22  ;;  %v4628_v9 = vsel %vm1551_vm2, %v2208_v49, %v2221_v12  ;;  %v2309_v20 = vmul.f32 %v4267_v25, %v4378_v18  ;;  %v4634_v31 = vmul.f32 %v4279_v34, %v4396_v6  ;;  %2825 = vmatpush1.bf16.msra.mxu1 %v3605_v23 }
 0x1e2   : > { %v4637_v53 = vsel %vm1628_vm3, %v2343_v22, %v2356_v2  ;;  %v2340_v24 = vrot.slane %v2314_v0, 2  ;;  %v2354_v56 = vrot.slane %v2319_v36, 2  ;;  %v4641_v46 = vmul.f32 %v4279_v34, %v4403_v14  ;;  %1997 = vrot.lane.b32.xlu0 %v4500_v50, %s3886_s12  ;;  %v3610_v22 = vld [vmem:[#allocation8 + $0x74] ss:$8 sps:$4 sm:$0xff]   ;;  %v3613_v36 = vld [vmem:[#allocation8 + $0x84] ss:$8 sps:$4 sm:$0xff]  }
 0x1e3   : > { %1993 = vrot.lane.b32.xlu1 %v4489_v45, %s3886_s12  ;;  %v2339_v25 = vrot.slane %v2309_v20, 2  ;;  %v1806_v49 = vmul.f32 %v4275_v33, %v4396_v6  ;;  %v1811_v1 = vmul.f32 %v4275_v33, %v4403_v14  ;;  %v1941_v47 = vmul.f32 %v4285_v37, %v4396_v6  ;;  %2826 = vmatprep.subr.bf16.mxu1 %v3610_v22 }
 0x1e4   : > { %v4654_v57 = vsel %vm1628_vm3, %v2340_v24, %v2354_v56  ;;  %v1946_v34 = vmul.f32 %v4285_v37, %v4403_v14  ;;  %v4660_v45 = vmul.f32 %v4376_v17, %v4396_v6  ;;  %v4664_v50 = vmul.f32 %v4376_v17, %v4403_v14 }
 0x1e5   : > { %v4667_v59 = vsel %vm1628_vm3, %v2339_v25, %v2340_v24  ;;  %v1842_v32 = vrot.slane %v1806_v49, 1  ;;  %v1843_v61 = vrot.slane %v1811_v1, 1  ;;  %v1977_v38 = vrot.slane %v1941_v47, 2  ;;  %2827 = vmatpush1.bf16.msra.mxu1 %v3608_v42  ;;  %v3611_v49 = vld [vmem:[#allocation8 + $0x80] ss:$8 sps:$4 sm:$0xff]  }
 0x1e6   : > { %v1978_v48 = vrot.slane %v1946_v34, 2  ;;  %v2177_v3 = vmul.f32 %v4372_v11, %v4396_v6  ;;  %v2182_v54 = vmul.f32 %v4372_v11, %v4403_v14  ;;  %v2312_v17 = vmul.f32 %v4386_v41, %v4396_v6  ;;  %2233 = vrot.lane.b32.xlu0 %v4527_v8, %s3885_s23  ;;  %v5181_v34 = vld [vmem:[#allocation20_spill] sm:$0xff]  ;;  %2828 = vmatprep.subr.bf16.mxu1 %v3613_v36  ;;  %v5184_v36 = vld [vmem:[#allocation22_spill] sm:$0xff] }
 0x1e7   : > { %2229 = vrot.lane.b32.xlu1 %v4505_v16, %s3885_s23  ;;  %v4680_v12 = vsel %vm1551_vm2, %v1842_v32, %v1843_v61  ;;  %v2317_v2 = vmul.f32 %v4386_v41, %v4403_v14  ;;  %v1816_v0 = vmul.f32 %v4275_v33, %v4452_v5  ;;  %v1951_v8 = vmul.f32 %v4285_v37, %v4452_v5 }
 0x1e8   : > { %v4687_v20 = vsel %vm1628_vm3, %v1977_v38, %v1978_v48  ;;  %v2213_v23 = vrot.slane %v2177_v3, 1  ;;  %v2214_v58 = vrot.slane %v2182_v54, 1  ;;  %v2348_v24 = vrot.slane %v2312_v17, 2  ;;  %v3616_v38 = vld [vmem:[#allocation8 + $0x94] ss:$8 sps:$4 sm:$0xff]  }
 0x1e9   : > { %v2349_v16 = vrot.slane %v2317_v2, 2  ;;  %v1854_v56 = vrot.slane %v1816_v0, 1  ;;  %v2187_v25 = vmul.f32 %v4372_v11, %v4452_v5  ;;  %v2322_v1 = vmul.f32 %v4386_v41, %v4452_v5  ;;  %v5182_v17 = vld [vmem:[#allocation21_spill] sm:$0xff]  ;;  %v5183_v2 = vld [vmem:[#allocation19_spill] sm:$0xff]  ;;  %2829 = vmatpush1.bf16.msra.mxu1 %v3611_v49 }
 0x1ea   : > { %v4694_v33 = vsel %vm1551_vm2, %v2213_v23, %v2214_v58  ;;  %v1495_v47 = vmul.f32 %v4311_v30, %v4378_v18  ;;  %v1527_v32 = vmul.f32 %v5181_v34, %v4378_v18  ;;  %1860 = vrot.lane.b32.xlu0 %v4545_v51, %s3886_s12  ;;  %v1989_v41 = vrot.slane %v1951_v8, 2  ;;  %2830 = vmatprep.subr.bf16.mxu1 %v3616_v38 }
 0x1eb   : > { %1995 = vrot.lane.b32.xlu1 %v4532_v27, %s3886_s12  ;;  %v4707_v37 = vsel %vm1628_vm3, %v2348_v24, %v2349_v16  ;;  %v4710_v11 = vsel %vm1551_vm2, %v1843_v61, %v1854_v56  ;;  %v2225_v42 = vrot.slane %v2187_v25, 1  ;;  %v2360_v3 = vrot.slane %v2322_v1, 2  ;;  %v3614_v24 = vld [vmem:[#allocation8 + $0x90] ss:$8 sps:$4 sm:$0xff]  }
 0x1ec   : > { %v1552_v54 = vrot.slane %v1527_v32, 1  ;;  %v1604_v22 = vmul.f32 %v5182_v17, %v4378_v18  ;;  %v1496_v0 = vmul.f32 %v5183_v2, %v4382_v26  ;;  %v4717_v27 = vsel %vm1628_vm3, %v1978_v48, %v1989_v41  ;;  %v5186_v48 = vld [vmem:[#allocation23_spill] sm:$0xff] }
 0x1ed   : > { %v4720_v51 = vsel %vm1551_vm2, %v2214_v58, %v2225_v42  ;;  %v1528_v61 = vmul.f32 %v5184_v36, %v4382_v26  ;;  %v1531_v23 = vmul.f32 %v5181_v34, %v4388_v35  ;;  %v4727_v56 = vsel %vm1628_vm3, %v2349_v16, %v2360_v3  ;;  %v3619_v58 = vld [vmem:[#allocation8 + $0xa4] ss:$8 sps:$4 sm:$0xff]   ;;  %2831 = vmatpush1.bf16.msra.mxu1 %v3614_v24 }
 0x1ee   : > { %5185 = vst [vmem:[#allocation20_spill] sm:$0xff] %v4727_v56  ;;  %v1629_v18 = vrot.slane %v1604_v22, 2  ;;  %v1532_v8 = vmul.f32 %v5184_v36, %v4398_v13  ;;  %v1605_v25 = vmul.f32 %v5186_v48, %v4382_v26  ;;  %2007 = vrot.lane.b32.xlu0 %v4555_v19, %s3886_s12  ;;  %v1608_v16 = vmul.f32 %v5182_v17, %v4388_v35 }
 0x1ef   : > { %2231 = vrot.lane.b32.xlu1 %v4552_v62, %s3885_s23  ;;  %v1553_v49 = vrot.slane %v1531_v23, 1  ;;  %v1555_v1 = vrot.slane %v1528_v61, 1  ;;  %v1609_v32 = vmul.f32 %v5186_v48, %v4398_v13  ;;  %v1499_v26 = vmul.f32 %v4311_v30, %v4388_v35  ;;  %v3617_v61 = vld [vmem:[#allocation8 + $0xa0] ss:$8 sps:$4 sm:$0xff]   ;;  %2832 = vmatprep.subr.bf16.mxu1 %v3619_v58 }
 0x1f0   : > { %v1556_v41 = vrot.slane %v1532_v8, 1  ;;  %v1632_v42 = vrot.slane %v1605_v25, 2  ;;  %v1500_v38 = vmul.f32 %v5183_v2, %v4398_v13  ;;  %v1630_v3 = vrot.slane %v1608_v16, 2  ;;  %v5188_v25 = vld [vmem:[#allocation27_spill] sm:$0xff] }
 0x1f1   : > { %v1554_v62 = vsel %vm1551_vm2, %v1552_v54, %v1553_v49  ;;  %v1633_v19 = vrot.slane %v1609_v32, 2  ;;  %v1535_v22 = vmul.f32 %v5181_v34, %v4440_v28  ;;  %v1536_v8 = vmul.f32 %v5184_v36, %v4450_v60  ;;  %2833 = vmatpush1.bf16.msra.mxu1 %v3617_v61 }
 0x1f2   : > { %v1557_v23 = vsel %vm1551_vm2, %v1555_v1, %v1556_v41  ;;  %v1580_v56 = vadd.f32 %v1554_v62, %v1495_v47  ;;  %v1612_v30 = vmul.f32 %v5182_v17, %v4440_v28  ;;  %2003 = vrot.lane.b32.xlu0 %v4567_v4, %s3886_s12  ;;  %v1631_v13 = vsel %vm1628_vm3, %v1629_v18, %v1630_v3  ;;  %v3622_v47 = vld [vmem:[#allocation8 + $0xb4] ss:$8 sps:$4 sm:$0xff]   ;;  %v3620_v4 = vld [vmem:[#allocation8 + $0xb0] ss:$8 sps:$4 sm:$0xff]  }
 0x1f3   : > { %1872 = vrot.lane.b32.xlu1 %v4562_v15, %s3886_s12  ;;  %v1581_v35 = vadd.f32 %v1557_v23, %v1496_v0  ;;  %v1634_v34 = vsel %vm1628_vm3, %v1632_v42, %v1633_v19  ;;  %v1564_v54 = vrot.slane %v1535_v22, 1  ;;  %v1566_v36 = vrot.slane %v1536_v8, 1  ;;  %v5187_v0 = vld [vmem:[#allocation26_spill] sm:$0xff]  ;;  %2834 = vmatprep.subr.bf16.mxu1 %v3622_v47  ;;  %v5189_v42 = vld [vmem:[#allocation28_spill] sm:$0xff]  ;;  %v5192_v47 = vld [vmem:[#allocation31_spill] sm:$0xff] }
 0x1f4   : > { %v4759_v2 = vadd.f32 %v1631_v13, %v1580_v56  ;;  %v1613_v28 = vmul.f32 %v5186_v48, %v4450_v60  ;;  %v1641_v17 = vrot.slane %v1612_v30, 2  ;;  %v1497_v18 = vmul.f32 %v5187_v0, %v4380_v21  ;;  %v5191_v30 = vld [vmem:[#allocation30_spill] sm:$0xff]  ;;  %v3625_v13 = vld [vmem:[#allocation8 + $0xc4] ss:$8 sps:$4 sm:$0xff]  }
 0x1f5   : > { %v4763_v24 = vadd.f32 %v1634_v34, %v1581_v35  ;;  %v1565_v15 = vsel %vm1551_vm2, %v1553_v49, %v1564_v54  ;;  %v1529_v58 = vmul.f32 %v5188_v25, %v4380_v21  ;;  %v1567_v56 = vsel %vm1551_vm2, %v1556_v41, %v1566_v36  ;;  %2835 = vmatpush1.bf16.msra.mxu1 %v3620_v4 }
 0x1f6   : > { %v1584_v1 = vadd.f32 %v1565_v15, %v1499_v26  ;;  %v1642_v16 = vsel %vm1628_vm3, %v1630_v3, %v1641_v17  ;;  %v1643_v32 = vrot.slane %v1613_v28, 2  ;;  %2243 = vrot.lane.b32.xlu0 %v4578_v29, %s3885_s23  ;;  %v1585_v60 = vadd.f32 %v1567_v56, %v1500_v38  ;;  %2836 = vmatprep.subr.bf16.mxu1 %v3625_v13  ;;  %v5196_v13 = vld [vmem:[#allocation18_spill] sm:$0xff] }
 0x1f7   : > { %1868 = vrot.lane.b32.xlu1 %v4583_v40, %s3886_s12  ;;  %v1533_v48 = vmul.f32 %v5188_v25, %v4390_v10  ;;  %v1558_v49 = vrot.slane %v1529_v58, 1  ;;  %v1606_v62 = vmul.f32 %v5189_v42, %v4380_v21  ;;  %v1610_v3 = vmul.f32 %v5189_v42, %v4390_v10 }
 0x1f8   : > { %v1644_v41 = vsel %vm1628_vm3, %v1633_v19, %v1643_v32  ;;  %v4781_v26 = vadd.f32 %v1642_v16, %v1584_v1  ;;  %v1501_v29 = vmul.f32 %v5187_v0, %v4390_v10  ;;  %v1537_v61 = vmul.f32 %v5188_v25, %v4442_v44  ;;  %v5190_v19 = vld [vmem:[#allocation29_spill] sm:$0xff]  ;;  %v3623_v10 = vld [vmem:[#allocation8 + $0xc0] ss:$8 sps:$4 sm:$0xff]  }
 0x1f9   : > { %v4787_v22 = vadd.f32 %v1644_v41, %v1585_v60  ;;  %v1559_v40 = vrot.slane %v1533_v48, 1  ;;  %v1635_v38 = vrot.slane %v1606_v62, 2  ;;  %v1636_v23 = vrot.slane %v1610_v3, 2  ;;  %2837 = vmatpush1.bf16.msra.mxu1 %v3623_v10  ;;  %v5195_v10 = vld [vmem:[#allocation17_spill] sm:$0xff] }
 0x1fa   : > { %v1614_v21 = vmul.f32 %v5189_v42, %v4442_v44  ;;  %v1498_v8 = vmul.f32 %v5190_v19, %v4396_v6  ;;  %v1530_v35 = vmul.f32 %v5191_v30, %v4396_v6  ;;  %2239 = vrot.lane.b32.xlu0 %v4590_v43, %s3885_s23  ;;  %v1568_v54 = vrot.slane %v1537_v61, 1  ;;  %v3626_v42 = vld [vmem:[#allocation8 + $0xd0] ss:$8 sps:$4 sm:$0xff]   ;;  %v3634_v61 = vld [vmem:[#allocation8 + $0xf4] ss:$8 sps:$4 sm:$0xff]  }
 0x1fb   : > { %2368 = vrot.lane.b32.xlu1 %v4601_v7, %s3885_s23  ;;  %v1560_v34 = vsel %vm1551_vm2, %v1558_v49, %v1559_v40  ;;  %v1534_v44 = vmul.f32 %v5191_v30, %v4403_v14  ;;  %v1607_v36 = vmul.f32 %v5192_v47, %v4396_v6  ;;  %v1637_v17 = vsel %vm1628_vm3, %v1635_v38, %v1636_v23  ;;  %v3631_v38 = vld [vmem:[#allocation8 + $0xe4] ss:$8 sps:$4 sm:$0xff]  }
 0x1fc   : > { %v1582_v28 = vadd.f32 %v1560_v34, %v1497_v18  ;;  %v1645_v15 = vrot.slane %v1614_v21, 2  ;;  %v1561_v4 = vrot.slane %v1530_v35, 1  ;;  %v1569_v43 = vsel %vm1551_vm2, %v1559_v40, %v1568_v54  ;;  %v3629_v40 = vld [vmem:[#allocation8 + $0xe0] ss:$8 sps:$4 sm:$0xff]   ;;  %v5197_v54 = vld [vmem:[#allocation25_spill] sm:$0xff] }
 0x1fd   : > { %v1562_v7 = vrot.slane %v1534_v44, 1  ;;  %v1611_v0 = vmul.f32 %v5192_v47, %v4403_v14  ;;  %v1638_v25 = vrot.slane %v1607_v36, 2  ;;  %v1586_v56 = vadd.f32 %v1569_v43, %v1501_v29 }
 0x1fe   : > { %v4810_v58 = vadd.f32 %v1637_v17, %v1582_v28  ;;  %v1646_v1 = vsel %vm1628_vm3, %v1636_v23, %v1645_v15  ;;  %v1502_v6 = vmul.f32 %v5190_v19, %v4403_v14  ;;  %1870 = vrot.lane.b32.xlu0 %v4613_v55, %s3886_s12  ;;  %v1538_v32 = vmul.f32 %v5191_v30, %v4452_v5  ;;  %v3628_v14 = vld [vmem:[#allocation8 + $0xd4] ss:$8 sps:$4 sm:$0xff]  }
 0x1ff   : > { %2378 = vrot.lane.b32.xlu1 %v4604_v63, %s3885_s23  ;;  %v1563_v18 = vsel %vm1551_vm2, %v1561_v4, %v1562_v7  ;;  %v1639_v16 = vrot.slane %v1611_v0, 2  ;;  %v1615_v60 = vmul.f32 %v5192_v47, %v4452_v5  ;;  %v4824_v48 = vadd.f32 %v1646_v1, %v1586_v56  ;;  %2838 = vmatprep.subr.bf16.mxu1 %v3628_v14  ;;  %v5198_v47 = vld [vmem:[#allocation24_spill] sm:$0xff] }
 0x200   : > { %v1583_v49 = vadd.f32 %v1563_v18, %v1498_v8  ;;  %v1570_v63 = vrot.slane %v1538_v32, 1  ;;  %2839 = vmatpush1.bf16.msra.mxu1 %v3626_v42  ;;  %v5193_v8 = vld [vmem:[#allocation16_spill] sm:$0xff] }
 0x201   : > { %v1640_v62 = vsel %vm1628_vm3, %v1638_v25, %v1639_v16  ;;  %v1647_v41 = vrot.slane %v1615_v60, 2  ;;  %2840 = vmatprep.subr.bf16.mxu1 %v3631_v38 }
 0x202   : > { %v4827_v3 = vadd.f32 %v1640_v62, %v1583_v49  ;;  %2366 = vrot.lane.b32.xlu0 %v4625_v39, %s3885_s23  ;;  %v1571_v55 = vsel %vm1551_vm2, %v1562_v7, %v1570_v63  ;;  %v3637_v39 = vld [vmem:[#allocation8 + $0x104] ss:$8 sps:$4 sm:$0xff]  }
 0x203   : > { %2005 = vrot.lane.b32.xlu1 %v4618_v52, %s3886_s12  ;;  %v1648_v5 = vsel %vm1628_vm3, %v1639_v16, %v1647_v41  ;;  %v1587_v29 = vadd.f32 %v1571_v55, %v1502_v6  ;;  %v3632_v52 = vld [vmem:[#allocation8 + $0xf0] ss:$8 sps:$4 sm:$0xff]  }
 0x204   : > { %2841 = vmatpush1.bf16.msra.mxu1 %v3629_v40 }
 0x205   : > { %v4835_v23 = vadd.f32 %v1648_v5, %v1587_v29  ;;  %2842 = vmatprep.subr.bf16.mxu1 %v3634_v61 }
 0x206   : > { %2376 = vrot.lane.b32.xlu0 %v4637_v53, %s3885_s23 }
 0x207   : > { %2241 = vrot.lane.b32.xlu1 %v4628_v9, %s3885_s23 }
 0x208   : > { %2843 = vmatpush1.bf16.msra.mxu1 %v3632_v52 }
 0x209   : > { %2855 = vmatprep.subr.bf16.mxu1 %v3637_v39 }
 0x20a   : > { %2364 = vrot.lane.b32.xlu0 %v4667_v59, %s3885_s23 }
 0x20b   : > { %2374 = vrot.lane.b32.xlu1 %v4654_v57, %s3885_s23 }
 0x20e   : > { %1728 = vrot.lane.b32.xlu0 %v4634_v31, %s3886_s12 }
 0x212   : > { %1738 = vrot.lane.b32.xlu0 %v4641_v46, %s3886_s12 }
 0x216   : > { %1864 = vrot.lane.b32.xlu0 %v4680_v12, %s3886_s12  ;;  %v5194_v12 = vld [vmem:[#allocation15_spill] sm:$0xff] }
 0x21a   : > { %1999 = vrot.lane.b32.xlu0 %v4687_v20, %s3886_s12 }
 0x21e   : > { %2100 = vrot.lane.b32.xlu0 %v4660_v45, %s3885_s23 }
 0x21f   : > { %v1427_v9 = vpop.f32.mrb[8].mxu0 }
 0x220   : > { %v1445_v53 = vmax.f32 %v1427_v9, 0.0  ;;  %v1429_v57 = vpop.f32.mrb[9].mxu0 }
 0x221   : > { %v1430_v59 = vpop.f32.mrb[10].mxu0 }
 0x222   : > { %v1460_v21 = vmin.f32 %v1445_v53, 6.0  ;;  %v1450_v31 = vmax.f32 %v1430_v59, 0.0  ;;  %2110 = vrot.lane.b32.xlu0 %v4664_v50, %s3885_s23  ;;  %v1432_v19 = vpop.f32.mrb[11].mxu0 }
 0x224   : > { %v1465_v46 = vmin.f32 %v1450_v31, 6.0  ;;  %v1706_v30 = vmul.f32 %v5193_v8, %v1460_v21  ;;  %v1807_v35 = vmul.f32 %v5194_v12, %v1460_v21  ;;  %v1942_v20 = vmul.f32 %v5195_v10, %v1460_v21 }
 0x225   : > { %v2178_v34 = vmul.f32 %v5196_v13, %v1460_v21  ;;  %v2313_v44 = vmul.f32 %v5197_v54, %v1460_v21  ;;  %v2078_v36 = vmul.f32 %v5198_v47, %v1460_v21  ;;  %v5199_v21 = vld [vmem:[#allocation20_spill] sm:$0xff] }
 0x226   : > { %2235 = vrot.lane.b32.xlu0 %v4694_v33, %s3885_s23  ;;  %1730 = vrot.lane.b32.xlu1 %v1706_v30, %s3886_s12  ;;  %v1812_v45 = vmul.f32 %v5194_v12, %v1465_v46  ;;  %v1947_v28 = vmul.f32 %v5195_v10, %v1465_v46  ;;  %v2183_v17 = vmul.f32 %v5196_v13, %v1465_v46  ;;  %v1845_v43 = vrot.slane %v1807_v35, 1 }
 0x227   : > { %v1435_v50 = vpop.f32.mrb[12].mxu0  ;;  %v2318_v0 = vmul.f32 %v5197_v54, %v1465_v46  ;;  %v1980_v25 = vrot.slane %v1942_v20, 2  ;;  %v2216_v1 = vrot.slane %v2178_v34, 1  ;;  %v2351_v60 = vrot.slane %v2313_v44, 2 }
 0x228   : > { %v1455_v15 = vmax.f32 %v1435_v50, 0.0  ;;  %v1437_v4 = vpop.f32.mrb[13].mxu0  ;;  %v1846_v7 = vrot.slane %v1812_v45, 1  ;;  %v1981_v56 = vrot.slane %v1947_v28, 2  ;;  %v2217_v6 = vrot.slane %v2183_v17, 1 }
 0x229   : > { %v1438_v33 = vpop.f32.mrb[14].mxu0  ;;  %v2352_v49 = vrot.slane %v2318_v0, 2  ;;  %v1711_v42 = vmul.f32 %v5193_v8, %v1465_v46  ;;  %v2083_v52 = vmul.f32 %v5198_v47, %v1465_v46 }
 0x22a   : > { %v1470_v18 = vmin.f32 %v1455_v15, 6.0  ;;  %2370 = vrot.lane.b32.xlu0 %v4707_v37, %s3885_s23  ;;  %2102 = vrot.lane.b32.xlu1 %v2078_v36, %s3885_s23  ;;  %v1439_v16 = vpop.f32.mrb[15].mxu0  ;;  %v1847_v32 = vsel %vm1551_vm2, %v1845_v43, %v1846_v7  ;;  %v1982_v14 = vsel %vm1628_vm3, %v1980_v25, %v1981_v56  ;;  %v2218_v62 = vsel %vm1551_vm2, %v2216_v1, %v2217_v6 }
 0x22b   : > { %v2353_v63 = vsel %vm1628_vm3, %v2351_v60, %v2352_v49 }
 0x22c   : > { %v1817_v41 = vmul.f32 %v5194_v12, %v1470_v18  ;;  %v1952_v55 = vmul.f32 %v5195_v10, %v1470_v18  ;;  %v2188_v37 = vmul.f32 %v5196_v13, %v1470_v18  ;;  %v2323_v5 = vmul.f32 %v5197_v54, %v1470_v18 }
 0x22e   : > { %1874 = vrot.lane.b32.xlu0 %v4710_v11, %s3886_s12  ;;  %1740 = vrot.lane.b32.xlu1 %v1711_v42, %s3886_s12  ;;  %v1856_v29 = vrot.slane %v1817_v41, 1  ;;  %v1991_v40 = vrot.slane %v1952_v55, 2  ;;  %v2227_v38 = vrot.slane %v2188_v37, 1  ;;  %v2362_v61 = vrot.slane %v2323_v5, 2 }
 0x230   : > { %v1857_v39 = vsel %vm1551_vm2, %v1846_v7, %v1856_v29  ;;  %v1992_v9 = vsel %vm1628_vm3, %v1981_v56, %v1991_v40  ;;  %v2228_v53 = vsel %vm1551_vm2, %v2217_v6, %v2227_v38  ;;  %v2363_v57 = vsel %vm1628_vm3, %v2352_v49, %v2362_v61 }
 0x232   : > { %2009 = vrot.lane.b32.xlu0 %v4717_v27, %s3886_s12  ;;  %2112 = vrot.lane.b32.xlu1 %v2083_v52, %s3885_s23 }
 0x236   : > { %2245 = vrot.lane.b32.xlu0 %v4720_v51, %s3885_s23  ;;  %1866 = vrot.lane.b32.xlu1 %v1847_v32, %s3886_s12 }
 0x238   : > { %v1723_v59 = vpop.permute.xlu0 %1722 }
 0x239   : > { %v4896_v11 = vpop.permute.xlu1 %1726 }
 0x23a   : > { %2380 = vrot.lane.b32.xlu0 %v5199_v21, %s3885_s23  ;;  %2001 = vrot.lane.b32.xlu1 %v1982_v14, %s3886_s12 }
 0x23c   : > { %v4903_v19 = vpop.permute.xlu0 %2098 }
 0x23d   : > { %v4901_v31 = vpop.permute.xlu1 %2094 }
 0x23e   : > { %2237 = vrot.lane.b32.xlu1 %v2218_v62, %s3885_s23 }
 0x240   : > { %v1725_v46 = vpop.permute.xlu0 %1724 }
 0x241   : > { %v4906_v27 = vpop.permute.xlu1 %2096  ;;  %v1744_v4 = vsel %vm1742_vm4, %v1725_v46, %v4896_v11  ;;  %v1743_v56 = vsel %vm1742_vm4, %v1723_v59, %v1725_v46 }
 0x242   : > { %2372 = vrot.lane.b32.xlu1 %v2353_v63, %s3885_s23  ;;  %v1760_v7 = vadd.f32 %v1744_v4, %v4763_v24  ;;  %v1759_v32 = vadd.f32 %v1743_v56, %v4759_v2  ;;  %v2115_v63 = vsel %vm2065_vm1, %v4906_v27, %v4903_v19  ;;  %v2114_v46 = vsel %vm2065_vm1, %v4901_v31, %v4906_v27 }
 0x244   : > { %v4911_v8 = vpop.permute.xlu0 %2108 }
 0x245   : > { %v4909_v51 = vpop.permute.xlu1 %1736 }
 0x246   : > { %1876 = vrot.lane.b32.xlu1 %v1857_v39, %s3886_s12 }
 0x248   : > { %v2105_v30 = vpop.permute.xlu0 %2104 }
 0x249   : > { %v1733_v12 = vpop.permute.xlu1 %1732 }
 0x24a   : > { %2011 = vrot.lane.b32.xlu1 %v1992_v9, %s3886_s12 }
 0x24c   : > { %v1735_v10 = vpop.permute.xlu0 %1734 }
 0x24d   : > { %v2107_v35 = vpop.permute.xlu1 %2106  ;;  %v1747_v49 = vsel %vm1742_vm4, %v1733_v12, %v1735_v10  ;;  %v1748_v24 = vsel %vm1742_vm4, %v1735_v10, %v4909_v51 }
 0x24e   : > { %2247 = vrot.lane.b32.xlu1 %v2228_v53, %s3885_s23  ;;  %v1763_v2 = vadd.f32 %v1747_v49, %v4781_v26  ;;  %v1764_v37 = vadd.f32 %v1748_v24, %v4787_v22  ;;  %v2118_v12 = vsel %vm2065_vm1, %v2105_v30, %v2107_v35  ;;  %v2119_v10 = vsel %vm2065_vm1, %v2107_v35, %v4911_v8 }
 0x250   : > { %v1859_v13 = vpop.permute.xlu0 %1858 }
 0x251   : > { %v4916_v20 = vpop.permute.xlu1 %1862 }
 0x252   : > { %2382 = vrot.lane.b32.xlu1 %v2363_v57, %s3885_s23 }
 0x254   : > { %v4919_v45 = vpop.permute.xlu0 %1997 }
 0x255   : > { %v1994_v34 = vpop.permute.xlu1 %1993 }
 0x258   : > { %v4921_v44 = vpop.permute.xlu0 %2233 }
 0x259   : > { %v2230_v54 = vpop.permute.xlu1 %2229 }
 0x25c   : > { %v1861_v47 = vpop.permute.xlu0 %1860 }
 0x25d   : > { %v1996_v50 = vpop.permute.xlu1 %1995  ;;  %v1879_v43 = vsel %vm1742_vm4, %v1861_v47, %v4916_v20  ;;  %v1878_v16 = vsel %vm1742_vm4, %v1859_v13, %v1861_v47 }
 0x25e   : > { %v1895_v25 = vadd.f32 %v1879_v43, %v1760_v7  ;;  %v2014_v18 = vsel %vm1742_vm4, %v1996_v50, %v4919_v45  ;;  %v1894_v42 = vadd.f32 %v1878_v16, %v1759_v32  ;;  %v2013_v29 = vsel %vm1742_vm4, %v1994_v34, %v1996_v50 }
 0x260   : > { %v4923_v28 = vpop.permute.xlu0 %2007  ;;  %v2030_v60 = vadd.f32 %v2014_v18, %v1895_v25  ;;  %v2029_v40 = vadd.f32 %v2013_v29, %v1894_v42 }
 0x261   : > { %v2232_v36 = vpop.permute.xlu1 %2231 }
 0x262   : > { %v2131_v5 = vadd.f32 %v2115_v63, %v2030_v60  ;;  %v2250_v9 = vsel %vm2065_vm1, %v2232_v36, %v4921_v44  ;;  %v2130_v13 = vadd.f32 %v2114_v46, %v2029_v40  ;;  %v2249_v25 = vsel %vm2065_vm1, %v2230_v54, %v2232_v36  ;;  %v3640_v40 = vld [vmem:[#allocation8 + $0x114] ss:$8 sps:$4 sm:$0xff]  }
 0x264   : > { %v2004_v15 = vpop.permute.xlu0 %2003  ;;  %v2266_v22 = vadd.f32 %v2250_v9, %v2131_v5  ;;  %v2265_v27 = vadd.f32 %v2249_v25, %v2130_v13  ;;  %v3652_v13 = vld [vmem:[#allocation8 + $0x154] ss:$8 sps:$4 sm:$0xff]  }
 0x265   : > { %v4925_v17 = vpop.permute.xlu1 %1872 }
 0x268   : > { %v4932_v0 = vpop.permute.xlu0 %2243 }
 0x269   : > { %v1869_v33 = vpop.permute.xlu1 %1868 }
 0x26c   : > { %v2240_v1 = vpop.permute.xlu0 %2239 }
 0x26d   : > { %v4935_v6 = vpop.permute.xlu1 %2368 }
 0x270   : > { %v1871_v62 = vpop.permute.xlu0 %1870 }
 0x271   : > { %v4944_v14 = vpop.permute.xlu1 %2378  ;;  %v1882_v41 = vsel %vm1742_vm4, %v1869_v33, %v1871_v62  ;;  %v1883_v55 = vsel %vm1742_vm4, %v1871_v62, %v4925_v17 }
 0x272   : > { %v1898_v38 = vadd.f32 %v1882_v41, %v1763_v2  ;;  %v1899_v61 = vadd.f32 %v1883_v55, %v1764_v37  ;;  %v3635_v37 = vld [vmem:[#allocation8 + $0x100] ss:$8 sps:$4 sm:$0xff]  }
 0x274   : > { %v2367_v39 = vpop.permute.xlu0 %2366 }
 0x275   : > { %v2006_v52 = vpop.permute.xlu1 %2005  ;;  %v2385_v26 = vsel %vm2065_vm1, %v2367_v39, %v4935_v6 }
 0x276   : > { %v2017_v53 = vsel %vm1742_vm4, %v2004_v15, %v2006_v52  ;;  %v2018_v57 = vsel %vm1742_vm4, %v2006_v52, %v4923_v28  ;;  %v2401_v34 = vadd.f32 %v2385_v26, %v2266_v22  ;;  %v3641_v22 = vld [vmem:[#allocation8 + $0x120] ss:$8 sps:$4 sm:$0xff]  }
 0x277   : > { %v2033_v59 = vadd.f32 %v2017_v53, %v1898_v38  ;;  %v2034_v21 = vadd.f32 %v2018_v57, %v1899_v61  ;;  %v3643_v57 = vld [vmem:[#allocation8 + $0x124] ss:$8 sps:$4 sm:$0xff]  }
 0x278   : > { %v2377_v4 = vpop.permute.xlu0 %2376  ;;  %v2409_v30 = vmax.f32 %v2401_v34, 0.0 }
 0x279   : > { %v2242_v50 = vpop.permute.xlu1 %2241  ;;  %v2134_v47 = vadd.f32 %v2118_v12, %v2033_v59  ;;  %v2135_v15 = vadd.f32 %v2119_v10, %v2034_v21  ;;  %v2389_v31 = vsel %vm2065_vm1, %v2377_v4, %v4944_v14  ;;  %v3644_v21 = vld [vmem:[#allocation8 + $0x130] ss:$8 sps:$4 sm:$0xff]   ;;  %v3649_v12 = vld [vmem:[#allocation8 + $0x144] ss:$8 sps:$4 sm:$0xff]  }
 0x27a   : > { %v2253_v43 = vsel %vm2065_vm1, %v2240_v1, %v2242_v50  ;;  %v2254_v7 = vsel %vm2065_vm1, %v2242_v50, %v4932_v0  ;;  %v2417_v42 = vmin.f32 %v2409_v30, 6.0  ;;  %v3650_v50 = vld [vmem:[#allocation8 + $0x150] ss:$8 sps:$4 sm:$0xff]  }
 0x27b   : > { %v2270_v33 = vadd.f32 %v2254_v7, %v2135_v15  ;;  %v2269_v35 = vadd.f32 %v2253_v43, %v2134_v47 }
 0x27c   : > { %v2365_v16 = vpop.permute.xlu0 %2364 }
 0x27d   : > { %v2405_v56 = vadd.f32 %v2389_v31, %v2270_v33  ;;  %v2375_v18 = vpop.permute.xlu1 %2374  ;;  %v2384_v60 = vsel %vm2065_vm1, %v2365_v16, %v2367_v39  ;;  %v3638_v39 = vld [vmem:[#allocation8 + $0x110] ss:$8 sps:$4 sm:$0xff]   ;;  %v3653_v33 = vld [vmem:[#allocation8 + $0x160] ss:$8 sps:$4 sm:$0xff]  }
 0x27e   : > { %v2388_v32 = vsel %vm2065_vm1, %v2375_v18, %v2377_v4  ;;  %v2400_v24 = vadd.f32 %v2384_v60, %v2265_v27  ;;  %v3655_v4 = vld [vmem:[#allocation8 + $0x164] ss:$8 sps:$4 sm:$0xff]   ;;  %v3659_v60 = vld [vmem:[#allocation8 + $0x180] ss:$8 sps:$4 sm:$0xff]  }
 0x27f   : > { %v2413_v1 = vmax.f32 %v2405_v56, 0.0  ;;  %v2404_v49 = vadd.f32 %v2388_v32, %v2269_v35  ;;  %v3656_v35 = vld [vmem:[#allocation8 + $0x170] ss:$8 sps:$4 sm:$0xff]  }
 0x280   : > { %v2408_v54 = vmax.f32 %v2400_v24, 0.0  ;;  %v4976_v36 = vpop.permute.xlu0 %1728  ;;  %v3664_v24 = vld [vmem:[#allocation8 + $0x194] ss:$8 sps:$4 sm:$0xff]  }
 0x281   : > { %v2421_v62 = vmin.f32 %v2413_v1, 6.0  ;;  %v2412_v63 = vmax.f32 %v2404_v49, 0.0  ;;  %v1745_v38 = vsel %vm1742_vm4, %v4896_v11, %v4976_v36 }
 0x282   : > { %v2416_v55 = vmin.f32 %v2408_v54, 6.0  ;;  %v1761_v9 = vadd.f32 %v1745_v38, %v4810_v58  ;;  %v3670_v38 = vld [vmem:[#allocation8 + $0x1b4] ss:$8 sps:$4 sm:$0xff]  }
 0x283   : > { %v2420_v41 = vmin.f32 %v2412_v63, 6.0  ;;  %v2425_v2 = vpack.c.bf16 %v2421_v62, %v2417_v42 }
 0x284   : > { %v4978_v29 = vpop.permute.xlu0 %1738 }
 0x285   : > { %v2424_v5 = vpack.c.bf16 %v2420_v41, %v2416_v55  ;;  %2844 = vmatprep.mubr.bf16.mxu1 %v2425_v2  ;;  %v1749_v61 = vsel %vm1742_vm4, %v4909_v51, %v4978_v29  ;;  %v3667_v55 = vld [vmem:[#allocation8 + $0x1a4] ss:$8 sps:$4 sm:$0xff]  }
 0x286   : > { %v1765_v52 = vadd.f32 %v1749_v61, %v4824_v48  ;;  %v3646_v48 = vld [vmem:[#allocation8 + $0x134] ss:$8 sps:$4 sm:$0xff]  }
 0x287   : > { %2845 = vmatmul.mubr.bf16.vlgmr.msra.gmra.mrb[8].mxu1 %v2424_v5 }
 0x288   : > { %2856 = vmatpush1.bf16.msra.mxu1 %v3635_v37  ;;  %v4988_v53 = vpop.permute.xlu0 %1864 }
 0x289   : > { %2857 = vmatprep.subr.bf16.mxu1 %v3640_v40  ;;  %v1880_v26 = vsel %vm1742_vm4, %v4916_v20, %v4988_v53  ;;  %v3647_v20 = vld [vmem:[#allocation8 + $0x140] ss:$8 sps:$4 sm:$0xff]  }
 0x28a   : > { %v1896_v11 = vadd.f32 %v1880_v26, %v1761_v9  ;;  %v3673_v26 = vld [vmem:[#allocation8 + $0x1c4] ss:$8 sps:$4 sm:$0xff]  }
 0x28c   : > { %2858 = vmatpush1.bf16.msra.mxu1 %v3638_v39  ;;  %v4993_v59 = vpop.permute.xlu0 %1999  ;;  %v3668_v39 = vld [vmem:[#allocation8 + $0x1b0] ss:$8 sps:$4 sm:$0xff]  }
 0x28d   : > { %2859 = vmatprep.subr.bf16.mxu1 %v3643_v57  ;;  %v2015_v51 = vsel %vm1742_vm4, %v4919_v45, %v4993_v59 }
 0x28e   : > { %v2031_v58 = vadd.f32 %v2015_v51, %v1896_v11  ;;  %v3671_v51 = vld [vmem:[#allocation8 + $0x1c0] ss:$8 sps:$4 sm:$0xff]  }
 0x290   : > { %2860 = vmatpush1.bf16.msra.mxu1 %v3641_v22  ;;  %v4998_v46 = vpop.permute.xlu0 %2100 }
 0x291   : > { %2861 = vmatprep.subr.bf16.mxu1 %v3646_v48  ;;  %v2116_v34 = vsel %vm2065_vm1, %v4903_v19, %v4998_v46  ;;  %v3658_v19 = vld [vmem:[#allocation8 + $0x174] ss:$8 sps:$4 sm:$0xff]  }
 0x292   : > { %v2132_v45 = vadd.f32 %v2116_v34, %v2031_v58  ;;  %v3674_v34 = vld [vmem:[#allocation8 + $0x1d0] ss:$8 sps:$4 sm:$0xff]  }
 0x294   : > { %2862 = vmatpush1.bf16.msra.mxu1 %v3644_v21  ;;  %v5000_v10 = vpop.permute.xlu0 %2110 }
 0x295   : > { %2863 = vmatprep.subr.bf16.mxu1 %v3649_v12  ;;  %v2120_v62 = vsel %vm2065_vm1, %v4911_v8, %v5000_v10  ;;  %v3676_v12 = vld [vmem:[#allocation8 + $0x1d4] ss:$8 sps:$4 sm:$0xff]  }
 0x298   : > { %2864 = vmatpush1.bf16.msra.mxu1 %v3647_v20  ;;  %v5005_v47 = vpop.permute.xlu0 %2235  ;;  %v1731_v15 = vpop.permute.xlu1 %1730 }
 0x299   : > { %2865 = vmatprep.subr.bf16.mxu1 %v3652_v13  ;;  %v2251_v43 = vsel %vm2065_vm1, %v4921_v44, %v5005_v47  ;;  %v3661_v44 = vld [vmem:[#allocation8 + $0x184] ss:$8 sps:$4 sm:$0xff]  }
 0x29a   : > { %v2267_v7 = vadd.f32 %v2251_v43, %v2132_v45 }
 0x29c   : > { %2866 = vmatpush1.bf16.msra.mxu1 %v3650_v50  ;;  %v5010_v25 = vpop.permute.xlu0 %2370  ;;  %v5012_v31 = vpop.permute.xlu1 %2102 }
 0x29d   : > { %2867 = vmatprep.subr.bf16.mxu1 %v3655_v4  ;;  %v2386_v27 = vsel %vm2065_vm1, %v4935_v6, %v5010_v25  ;;  %v2117_v4 = vsel %vm2065_vm1, %v4998_v46, %v5012_v31  ;;  %v3680_v31 = vld [vmem:[#allocation8 + $0x1f0] ss:$8 sps:$4 sm:$0xff]  }
 0x29e   : > { %v2402_v30 = vadd.f32 %v2386_v27, %v2267_v7 }
 0x2a0   : > { %2868 = vmatpush1.bf16.msra.mxu1 %v3653_v33  ;;  %v1875_v56 = vpop.permute.xlu0 %1874  ;;  %v1741_v18 = vpop.permute.xlu1 %1740  ;;  %v2410_v61 = vmax.f32 %v2402_v30, 0.0 }
 0x2a1   : > { %2869 = vmatprep.subr.bf16.mxu1 %v3658_v19  ;;  %v1884_v16 = vsel %vm1742_vm4, %v4925_v17, %v1875_v56  ;;  %v3662_v17 = vld [vmem:[#allocation8 + $0x190] ss:$8 sps:$4 sm:$0xff]  }
 0x2a2   : > { %v1900_v32 = vadd.f32 %v1884_v16, %v1765_v52  ;;  %v2418_v11 = vmin.f32 %v2410_v61, 6.0 }
 0x2a4   : > { %2870 = vmatpush1.bf16.msra.mxu1 %v3656_v35  ;;  %v5019_v1 = vpop.permute.xlu0 %2009  ;;  %v5021_v49 = vpop.permute.xlu1 %2112 }
 0x2a5   : > { %2871 = vmatprep.subr.bf16.mxu1 %v3661_v44  ;;  %v2019_v6 = vsel %vm1742_vm4, %v4923_v28, %v5019_v1  ;;  %v3665_v28 = vld [vmem:[#allocation8 + $0x1a0] ss:$8 sps:$4 sm:$0xff]  }
 0x2a6   : > { %v2035_v42 = vadd.f32 %v2019_v6, %v1900_v32 }
 0x2a8   : > { %2872 = vmatpush1.bf16.msra.mxu1 %v3659_v60  ;;  %v2136_v63 = vadd.f32 %v2120_v62, %v2035_v42  ;;  %v5029_v54 = vpop.permute.xlu0 %2245  ;;  %v1867_v41 = vpop.permute.xlu1 %1866 }
 0x2a9   : > { %2873 = vmatprep.subr.bf16.mxu1 %v3664_v24  ;;  %v2255_v2 = vsel %vm2065_vm1, %v4932_v0, %v5029_v54  ;;  %v1746_v0 = vsel %vm1742_vm4, %v4976_v36, %v1731_v15  ;;  %v1881_v48 = vsel %vm1742_vm4, %v4988_v53, %v1867_v41  ;;  %v1750_v36 = vsel %vm1742_vm4, %v4978_v29, %v1741_v18  ;;  %v3679_v53 = vld [vmem:[#allocation8 + $0x1e4] ss:$8 sps:$4 sm:$0xff]   ;;  %v3682_v29 = vld [vmem:[#allocation8 + $0x1f4] ss:$8 sps:$4 sm:$0xff]  }
 0x2aa   : > { %v2271_v37 = vadd.f32 %v2255_v2, %v2136_v63 }
 0x2ac   : > { %2874 = vmatpush1.bf16.msra.mxu1 %v3662_v17  ;;  %v2381_v5 = vpop.permute.xlu0 %2380  ;;  %v2002_v40 = vpop.permute.xlu1 %2001 }
 0x2ad   : > { %2875 = vmatprep.subr.bf16.mxu1 %v3667_v55  ;;  %v2390_v8 = vsel %vm2065_vm1, %v4944_v14, %v2381_v5  ;;  %v1762_v14 = vadd.f32 %v1746_v0, %v4827_v3  ;;  %v2016_v20 = vsel %vm1742_vm4, %v4993_v59, %v2002_v40  ;;  %v1766_v3 = vadd.f32 %v1750_v36, %v4835_v23  ;;  %v3677_v59 = vld [vmem:[#allocation8 + $0x1e0] ss:$8 sps:$4 sm:$0xff]  }
 0x2ae   : > { %v2406_v52 = vadd.f32 %v2390_v8, %v2271_v37  ;;  %v2121_v23 = vsel %vm2065_vm1, %v5000_v10, %v5021_v49 }
 0x2af   : > { %v1897_v13 = vadd.f32 %v1881_v48, %v1762_v14 }
 0x2b0   : > { %2876 = vmatpush1.bf16.msra.mxu1 %v3665_v28  ;;  %v2414_v9 = vmax.f32 %v2406_v52, 0.0  ;;  %v2238_v57 = vpop.permute.xlu1 %2237 }
 0x2b1   : > { %2877 = vmatprep.subr.bf16.mxu1 %v3670_v38  ;;  %v2032_v50 = vadd.f32 %v2016_v20, %v1897_v13  ;;  %v2252_v19 = vsel %vm2065_vm1, %v5005_v47, %v2238_v57 }
 0x2b2   : > { %v2422_v22 = vmin.f32 %v2414_v9, 6.0 }
 0x2b3   : > { %v2133_v43 = vadd.f32 %v2117_v4, %v2032_v50 }
 0x2b4   : > { %2878 = vmatpush1.bf16.msra.mxu1 %v3668_v39  ;;  %v2426_v58 = vpack.c.bf16 %v2422_v22, %v2418_v11  ;;  %v2373_v21 = vpop.permute.xlu1 %2372 }
 0x2b5   : > { %2879 = vmatprep.subr.bf16.mxu1 %v3673_v26  ;;  %v2387_v46 = vsel %vm2065_vm1, %v5010_v25, %v2373_v21  ;;  %v2268_v35 = vadd.f32 %v2252_v19, %v2133_v43 }
 0x2b7   : > { %v2403_v44 = vadd.f32 %v2387_v46, %v2268_v35 }
 0x2b8   : > { %2880 = vmatpush1.bf16.msra.mxu1 %v3671_v51  ;;  %v1877_v45 = vpop.permute.xlu1 %1876 }
 0x2b9   : > { %2881 = vmatprep.subr.bf16.mxu1 %v3676_v12  ;;  %v1885_v15 = vsel %vm1742_vm4, %v1875_v56, %v1877_v45  ;;  %v2411_v60 = vmax.f32 %v2403_v44, 0.0 }
 0x2ba   : > { %v1901_v7 = vadd.f32 %v1885_v15, %v1766_v3 }
 0x2bb   : > { %v2419_v49 = vmin.f32 %v2411_v60, 6.0 }
 0x2bc   : > { %2882 = vmatpush1.bf16.msra.mxu1 %v3674_v34  ;;  %v2012_v33 = vpop.permute.xlu1 %2011 }
 0x2bd   : > { %2883 = vmatprep.subr.bf16.mxu1 %v3679_v53  ;;  %v2020_v27 = vsel %vm1742_vm4, %v5019_v1, %v2012_v33 }
 0x2be   : > { %v2036_v30 = vadd.f32 %v2020_v27, %v1901_v7 }
 0x2c0   : > { %2884 = vmatpush1.bf16.msra.mxu1 %v3677_v59  ;;  %v2137_v56 = vadd.f32 %v2121_v23, %v2036_v30  ;;  %v2248_v18 = vpop.permute.xlu1 %2247 }
 0x2c1   : > { %2885 = vmatprep.subr.bf16.mxu1 %v3682_v29  ;;  %v2256_v47 = vsel %vm2065_vm1, %v5029_v54, %v2248_v18 }
 0x2c2   : > { %v2272_v16 = vadd.f32 %v2256_v47, %v2137_v56 }
 0x2c4   : > { %2886 = vmatpush1.bf16.msra.mxu1 %v3680_v31  ;;  %v2383_v32 = vpop.permute.xlu1 %2382 }
 0x2c5   : > { %v2391_v10 = vsel %vm2065_vm1, %v2381_v5, %v2383_v32 }
 0x2c6   : > { %v2407_v1 = vadd.f32 %v2391_v10, %v2272_v16 }
 0x2c8   : > { %v2415_v25 = vmax.f32 %v2407_v1, 0.0 }
 0x2ca   : > { %v2423_v24 = vmin.f32 %v2415_v25, 6.0 }
 0x2cc   : > { %v2427_v6 = vpack.c.bf16 %v2423_v24, %v2419_v49 }
 0x2ce   : > { %2887 = vmatprep.mubr.bf16.mxu1 %v2427_v6 }
 0x2cf   : > { %2888 = vmatmul.mubr.bf16.vlgmr.msra.gmra.mrb[8].mxu1 %v2426_v58 }
 0x3a2   : > { %v2889_v42 = vpop.f32.mrb[8].mxu1 }
 0x3a3   : > { %2898 = vst [vmem:[%s259_s6] sm:$0xff] %v2889_v42  ;;  %v2891_v62 = vpop.f32.mrb[9].mxu1 }
 0x3a4   : > { %2899 = vst [vmem:[%s259_s6 + $0x8] sm:$0xff] %v2891_v62  ;;  %v2893_v17 = vpop.f32.mrb[10].mxu1 }
 0x3a5   : > { %2900 = vst [vmem:[%s259_s6 + $0x10] sm:$0xff] %v2893_v17  ;;  %v2895_v63 = vpop.f32.mrb[11].mxu1 }
 0x3a6   : > { %2901 = vst [vmem:[%s259_s6 + $0x18] sm:$0xff] %v2895_v63 }
 0x3a7   : > { %3810 = shalt.err (!%p3807_p4)
}
 0x3a8   : > { %s3811_s5 = scalar_lea.hbm %s5069_s26, 512  ;;  %s3815_s23 = scalar_lea.hbm %s5117_s4, 1024 }
 0x3a9   : > { %p3812_p9 = scmp.ne.s32.totalorder %s5069_s26, %s3811_s5  ;;  %p3816_p8 = scmp.lt.u32.totalorder %s5069_s26, %s5117_s4 }
 0x3aa   : > { %p3817_p13 = scmp.lt.u32.totalorder %s3815_s23, %s3811_s5  ;;  %p3819_p10 = scmp.lt.u32.totalorder %s3811_s5, %s5069_s26 }
 0x3ab   : > { %p3813_p0 = pnand %p3812_p9, %p4060_p5 }
 0x3ac   : > { %p3818_p6 = por %p3817_p13, %p3816_p8 }
 0x3ad   : > { %p3814_p11 = pneg %p3813_p0 }
 0x3ae   : > { %p3820_p3 = por %p3819_p10, %p3818_p6 }
 0x3b0   : > { %p3821_p7 = pnand %p3820_p3, %p3814_p11 }
 0x3b2   : > { %3824 = shalt.err (!%p3821_p7)
}
 0x3b3   : > { %s3888_s6 = smov 256   ;;  %s3889_s8 = smov 16  }
 0x3b4   : > { %3296 = dma.vmem_to_hbm [thread:$0]  (%p4060_p5), %s5064_s28, 512, %s5069_s26, %s2903_s24, %s3888_s6, %s3888_s6, %s3889_s8  }
 0x3b5 PF: > { %s2932_s10 = sand.u32 1, %s3859_s15   ;;  %p5200_p12 = scmp.ne.s32.totalorder %s5148_s22, 0 }
 0x3b6   : > { %p5201_p1 = scmp.ge.s32.totalorder %s3871_s18, 2  ;;  %s2933_s25 = scalar_lea.sflag [#allocation4], %s2932_s10 }
 0x3b8   : > { %p3313_p2 = pnand %p5201_p1, %p5200_p12 }
 0x3ba   : > { %3854 = dma.done.wait (!%p3313_p2), %s2933_s25, 512  }
 0x3bb   : > { %3856 = vsyncadd (!%p3313_p2), %s2933_s25, 4294966784  ;;  %p19_p4 = scmp.ge.s32.totalorder %s4046_s14, 4   ;;  %s5202_s15 = smov %s3863_s16 }
 0x3bc   : > { %s5203_s16 = smov %s3867_s17  ;;  %s5204_s17 = smov %s4056_s29 }
 0x3bd   : > { %s5205_s18 = smov %s4046_s14  ;;  %21 = sbr.rel (!%p19_p4) target bundleno = 7 (0x7), region = 93 }
 0x3c4   :  { %2938 = vsyncpa [#allocation3], 1 }
 0x3c5   :  { %2940 = vsyncpa [#allocation3 + $0x1], 1 }
 0x3c6   :  { %2941 = vsyncpa [#allocation6], 1 }
 0x3c7   :  { %2942 = vsyncpa [#allocation9], 1 }
 0x3c8   :  { %2943 = vsyncpa [#allocation4], 1 }
 0x3c9   :  { %2945 = vsyncpa [#allocation4 + $0x1], 1 }

</bundles_post_ra>
